<compile_context>
chip_gen: v6e
topology: v6e:2x2x1
jax: 0.10.0
libtpu: 0.0.40
codegen_flags: <defaults>
</compile_context>

<pallas_src>
import numpy as np
import jax
import jax.numpy as jnp
from jax import lax
from jax.experimental import pallas as pl
from jax.experimental.pallas import tpu as pltpu

# ---- sizes fixed by the PyTorch module ----
NUM_CLASSES = 17          # multilabel / detector output channels
TXT_DIM = 768             # BERT text feature dim
NUM_ACTIONS = 5           # F.one_hot(..., num_classes=5)

# ---- small synthetic hyper-parameters (module __init__ args) ----
H, W = 10, 10             # Messenger-style grid
HW = H * W
HW_PAD = 104              # grid rows padded to a sublane multiple
EMMA_DIM = 24             # emma.emb_dim
VAL_DIM = 8               # val_emb_dim
EMB = EMMA_DIM + VAL_DIM  # emb_dim = 32
LATENT = 32               # latent_size
HIDDEN = 32               # hidden_size
MID = (EMB + NUM_CLASSES) // 2   # detector hidden channels = 24
L_TOK = 8                 # number of text tokens
ML_PAD = 24               # multilabel channels padded 17 -> 24 (zero cols)
GATES = 4 * HIDDEN        # 128: lane width of every slab panel

# ---- fused bf16 weight slab (SLAB_ROWS, 128); all offsets/lengths multiples of 8 ----
R_WTEXT = 0               # (768,128) cols 24:32 = txt_val in EMB coords, col 32 = scale_val
R_EMMA = 768              # (24,128)  rows 0:17 = emma table at cols 0:24
R_ENCW = 792              # (128,128) rows 0:32 = encoder 1x1 conv at cols 0:32
R_ENCB = 920              # (8,128)   row 0 = encoder bias (+ folded txt_val bias)
R_WGATE = 928             # (128,128) fused LSTM gate weights, gate order [i,f,o,g]
R_BGATE = 1056            # (8,128)   row 0 = gate bias (b_ih + b_hh)
R_WDET1 = 1064            # (32,128)  rows 0:32 = projw@decw@dw1 at cols 0:24
R_BDET1 = 1096            # (104,128) rows 0:100 = (pos + projb@decw + decb)@dw1 + db1
R_WDET2 = 1200            # (128,128) rows 0:24 = detector conv2 at cols 0:17
R_BDET2 = 1328            # (8,128)   row 0 = detector conv2 bias at cols 0:17
SLAB_ROWS = 1336


def world_model_kernel(act_ref,                       # SMEM scalar-prefetch: (T,) int32
                       ml_ref, text_ref, init_ref, slab_ref,
                       logit_ref, state_ref):
    f32 = jnp.float32
    t = pl.program_id(0)
    dot = lambda a, b: jnp.dot(a, b, preferred_element_type=f32)

    @pl.when(t == 0)
    def _():
        state_ref[...] = init_ref[...]                # [0 | 0 | h0 | c0]

    st_old = state_ref[...]                           # (1,128) f32, carried across steps

    # ---- text attention + value embedding: one K=768 bf16 MXU matmul ----
    tproj = dot(text_ref[0], slab_ref[R_WTEXT:R_WTEXT + TXT_DIM, :])    # (L,128) f32
    score = tproj[:, EMB:EMB + 1]                                       # (L,1) scale_val score
    score = score - jnp.max(score, axis=0, keepdims=True)
    e = jnp.exp(score)
    attn = e / jnp.sum(e, axis=0, keepdims=True)                        # softmax over tokens
    val = dot(jnp.ones((1, L_TOK), f32), attn * tproj)                  # (1,128) pooled value

    # ---- multilabel -> emb; synthetic encoder; mean-pool via MXU dot ----
    emb = dot(ml_ref[0], slab_ref[R_EMMA:R_EMMA + ML_PAD, :]) + val     # (104,128)
    enc = jnp.maximum(dot(emb, slab_ref[R_ENCW:R_ENCW + GATES, :])
                      + slab_ref[R_ENCB:R_ENCB + 1, :], 0.0)            # (104,128)
    lane_hw = lax.broadcasted_iota(jnp.int32, (1, HW_PAD), 1)
    meanrow = jnp.where(lane_hw < HW, 1.0 / HW, 0.0).astype(f32)        # zero the pad rows
    latent = dot(meanrow, enc)                                          # (1,128) cols 0:32

    # ---- LSTM cell: one fused (1,128)@(128,128) gate matmul, gate order [i,f,o,g] ----
    lane = lax.broadcasted_iota(jnp.int32, (1, GATES), 1)
    onehot = (lane == (LATENT + act_ref[t])).astype(f32)                # action at lanes 32:37
    x_cat = latent + onehot + st_old                                    # [lat|act|0|h|c]
    gat = dot(x_cat, slab_ref[R_WGATE:R_WGATE + GATES, :]) \
        + slab_ref[R_BGATE:R_BGATE + 1, :]                              # (1,128)
    sig = jax.nn.sigmoid(gat[:, 0:3 * HIDDEN])                          # i, f, o in one pass
    g_t = jnp.tanh(gat[:, 3 * HIDDEN:GATES])                            # g
    i_g = sig[:, 0:HIDDEN]
    f_g = sig[:, HIDDEN:2 * HIDDEN]
    o_g = sig[:, 2 * HIDDEN:3 * HIDDEN]
    c_new = f_g * st_old[:, 3 * HIDDEN:GATES] + i_g * g_t               # (1,32)
    h_new = o_g * jnp.tanh(c_new)                                       # (1,32)
    state_ref[...] = jnp.concatenate(
        [jnp.zeros((1, 2 * HIDDEN), f32), h_new, c_new], axis=1)        # [0|0|h|c]

    # ---- projection + decoder folded into detector conv1 (exact); conv2 -> logits ----
    hid = jnp.maximum(dot(h_new, slab_ref[R_WDET1:R_WDET1 + HIDDEN, :])
                      + slab_ref[R_BDET1:R_BDET1 + HW_PAD, :], 0.0)     # (104,128)
    logit_ref[0] = dot(hid, slab_ref[R_WDET2:R_WDET2 + GATES, :]) \
        + slab_ref[R_BDET2:R_BDET2 + 1, :]                              # lane-dense store


def make_params(key):
    """Original (unfused) f32 parameters, mirroring the PyTorch module's layers."""
    ks = jax.random.split(key, 20)

    def init(k, shape, fan_in):
        return jax.random.normal(k, shape, jnp.float32) / np.sqrt(fan_in)

    p = {}
    p['emma'] = init(ks[0], (NUM_CLASSES, EMMA_DIM), NUM_CLASSES)
    p['wsc'] = init(ks[1], (TXT_DIM, 1), TXT_DIM)          # scale_val Linear(768,1)
    p['bsc'] = init(ks[2], (1, 1), 1.0) * 0.1
    p['wtx'] = init(ks[3], (TXT_DIM, VAL_DIM), TXT_DIM)    # txt_val Linear(768, val_emb_dim)
    p['btx'] = init(ks[4], (1, VAL_DIM), 1.0) * 0.1
    p['encw'] = init(ks[5], (EMB, LATENT), EMB)
    p['encb'] = init(ks[6], (1, LATENT), 1.0) * 0.1
    p['wihl'] = init(ks[7], (4, LATENT, HIDDEN), LATENT + NUM_ACTIONS)   # PyTorch order [i,f,g,o]
    p['wiha'] = init(ks[8], (4, NUM_ACTIONS, HIDDEN), LATENT + NUM_ACTIONS)
    p['whh'] = init(ks[9], (4, HIDDEN, HIDDEN), HIDDEN)
    p['bih'] = init(ks[10], (4, 1, HIDDEN), 1.0) * 0.1
    p['bhh'] = init(ks[11], (4, 1, HIDDEN), 1.0) * 0.1
    p['projw'] = init(ks[12], (HIDDEN, LATENT), HIDDEN)
    p['projb'] = init(ks[13], (1, LATENT), 1.0) * 0.1
    p['decw'] = init(ks[14], (LATENT, EMB), LATENT)
    p['decb'] = init(ks[15], (1, EMB), 1.0) * 0.1
    p['pos'] = init(ks[16], (HW, EMB), EMB)
    p['dw1'] = init(ks[17], (EMB, MID), EMB)
    p['db1'] = init(ks[18], (1, MID), 1.0) * 0.1
    p['dw2'] = init(ks[19], (MID, NUM_CLASSES), MID)
    p['db2'] = jnp.zeros((1, NUM_CLASSES), jnp.float32)
    return p


def fuse_params(p):
    """Host-side (one-time) fusion into ONE lane-dense bf16 slab."""
    f32 = jnp.float32
    slab = jnp.zeros((SLAB_ROWS, GATES), f32)

    # text projections: value weights placed in EMB coords 24:32, scale weight at col 32.
    # scale_val bias dropped exactly (softmax shift invariance); txt_val bias folded below.
    slab = slab.at[R_WTEXT:R_WTEXT + TXT_DIM, EMMA_DIM:EMB].set(p['wtx'])
    slab = slab.at[R_WTEXT:R_WTEXT + TXT_DIM, EMB:EMB + 1].set(p['wsc'])

    # emma embedding table (17 classes -> EMMA coords 0:24); rows 17:24 / cols 24:128 zero.
    slab = slab.at[R_EMMA:R_EMMA + NUM_CLASSES, 0:EMMA_DIM].set(p['emma'])

    # synthetic encoder 1x1 conv + bias, with txt_val bias folded in exactly.
    slab = slab.at[R_ENCW:R_ENCW + EMB, 0:LATENT].set(p['encw'])
    btx_emb = jnp.zeros((1, EMB), f32).at[:, EMMA_DIM:EMB].set(p['btx'])
    encb_eff = p['encb'] + btx_emb @ p['encw']
    slab = slab.at[R_ENCB:R_ENCB + 1, 0:LATENT].set(encb_eff)

    # fused LSTM gate weights; x_cat rows: 0:32 latent | 32:37 action | 37:64 zero |
    # 64:96 h | 96:128 c (zero rows).  Gate columns reordered [i,f,o,g].
    order = (0, 1, 3, 2)   # PyTorch chunk order is [i, f, g, o]
    wlat = jnp.concatenate([p['wihl'][k] for k in order], axis=1)      # (32,128)
    wact = jnp.concatenate([p['wiha'][k] for k in order], axis=1)      # (5,128)
    whh = jnp.concatenate([p['whh'][k] for k in order], axis=1)        # (32,128)
    bg = jnp.concatenate([p['bih'][k] + p['bhh'][k] for k in order], axis=1)  # (1,128)
    slab = slab.at[R_WGATE:R_WGATE + LATENT, :].set(wlat)
    slab = slab.at[R_WGATE + 32:R_WGATE + 32 + NUM_ACTIONS, :].set(wact)
    slab = slab.at[R_WGATE + 64:R_WGATE + 96, :].set(whh)
    slab = slab.at[R_BGATE:R_BGATE + 1, :].set(bg)

    # projection + synthetic decoder folded into detector conv1 (exact: all linear).
    w_dec = p['projw'] @ p['decw']                         # (32,32)
    b_dec = p['projb'] @ p['decw'] + p['decb']             # (1,32)
    w_det1 = w_dec @ p['dw1']                              # (32,24)
    b_det1 = (p['pos'] + b_dec) @ p['dw1'] + p['db1']      # (100,24)
    slab = slab.at[R_WDET1:R_WDET1 + HIDDEN, 0:MID].set(w_det1)
    slab = slab.at[R_BDET1:R_BDET1 + HW, 0:MID].set(b_det1)

    # detector conv2 (1x1) + bias.
    slab = slab.at[R_WDET2:R_WDET2 + MID, 0:NUM_CLASSES].set(p['dw2'])
    slab = slab.at[R_BDET2:R_BDET2 + 1, 0:NUM_CLASSES].set(p['db2'])

    return slab.astype(jnp.bfloat16)


def _forward_impl(multilabel_seq, text_seq, actions, h0, c0, slab):
    """T forward steps in ONE pallas_call; (h,c) carried in a VMEM-resident block."""
    T = multilabel_seq.shape[0]
    ml = multilabel_seq.reshape(T, HW, NUM_CLASSES).astype(jnp.bfloat16)
    ml = jnp.pad(ml, ((0, 0), (0, HW_PAD - HW), (0, ML_PAD - NUM_CLASSES)))
    text = text_seq.astype(jnp.bfloat16)
    init = (jnp.zeros((1, GATES), jnp.float32)
            .at[:, 2 * HIDDEN:3 * HIDDEN].set(h0)
            .at[:, 3 * HIDDEN:GATES].set(c0))
    acts = actions.astype(jnp.int32)

    grid_spec = pltpu.PrefetchScalarGridSpec(
        num_scalar_prefetch=1,
        grid=(T,),
        in_specs=[
            pl.BlockSpec((1, HW_PAD, ML_PAD), lambda t, a: (t, 0, 0)),
            pl.BlockSpec((1, L_TOK, TXT_DIM), lambda t, a: (t, 0, 0)),
            pl.BlockSpec((1, GATES), lambda t, a: (0, 0)),
            pl.BlockSpec((SLAB_ROWS, GATES), lambda t, a: (0, 0)),   # weights: DMA'd once
        ],
        out_specs=(
            pl.BlockSpec((1, HW_PAD, GATES), lambda t, a: (t, 0, 0)),
            pl.BlockSpec((1, GATES), lambda t, a: (0, 0)),           # resident state carry
        ),
    )
    logit_pad, state = pl.pallas_call(
        world_model_kernel,
        out_shape=(
            jax.ShapeDtypeStruct((T, HW_PAD, GATES), jnp.float32),
            jax.ShapeDtypeStruct((1, GATES), jnp.float32),
        ),
        grid_spec=grid_spec,
        compiler_params=pltpu.CompilerParams(dimension_semantics=("arbitrary",)),
    )(acts, ml, text, init, slab)

    logits = logit_pad[:, :HW, :NUM_CLASSES].reshape(T, H, W, NUM_CLASSES)
    h = state[:, 2 * HIDDEN:3 * HIDDEN]
    c = state[:, 3 * HIDDEN:GATES]
    return logits, (h, c)


world_model_forward = jax.jit(_forward_impl)


def reference_forward(multilabel_seq, text_seq, actions, lstm_states, p):
    """Pure-JAX f32 reference using the ORIGINAL (unfused) parameters."""
    h, c = lstm_states
    T = multilabel_seq.shape[0]
    emma_emb = jnp.zeros((NUM_CLASSES, EMB), jnp.float32).at[:, :EMMA_DIM].set(p['emma'])
    logits = []
    for t in range(T):
        ml = multilabel_seq[t].reshape(HW, NUM_CLASSES)
        text = text_seq[t]
        score = text @ p['wsc'] + p['bsc']
        attn = jax.nn.softmax(score, axis=0)
        val = jnp.sum(attn * (text @ p['wtx'] + p['btx']), axis=0, keepdims=True)
        val_emb = jnp.zeros((1, EMB), jnp.float32).at[:, EMMA_DIM:].set(val)
        emb = ml @ emma_emb + val_emb
        enc = jnp.maximum(emb @ p['encw'] + p['encb'], 0.0)
        latent = jnp.mean(enc, axis=0, keepdims=True)
        aoh = jax.nn.one_hot(actions[t], NUM_ACTIONS, dtype=jnp.float32).reshape(1, NUM_ACTIONS)
        g = [latent @ p['wihl'][k] + aoh @ p['wiha'][k] + h @ p['whh'][k]
             + p['bih'][k] + p['bhh'][k] for k in range(4)]
        i_g = jax.nn.sigmoid(g[0]); f_g = jax.nn.sigmoid(g[1])
        g_g = jnp.tanh(g[2]); o_g = jax.nn.sigmoid(g[3])
        c = f_g * c + i_g * g_g
        h = o_g * jnp.tanh(c)
        pred_latent = h @ p['projw'] + p['projb']
        dec = pred_latent @ p['decw'] + p['decb'] + p['pos']
        hid = jnp.maximum(dec @ p['dw1'] + p['db1'], 0.0)
        logits.append((hid @ p['dw2'] + p['db2']).reshape(H, W, NUM_CLASSES))
    return jnp.stack(logits), (h, c)


if __name__ == "__main__":
    key = jax.random.PRNGKey(0)
    kcls, ktxt, kact, kst, kpar = jax.random.split(key, 5)

    T = 4  # timesteps fused into one kernel call
    classes = jax.random.randint(kcls, (T, H, W), 0, NUM_CLASSES)
    multilabel = jax.nn.one_hot(classes, NUM_CLASSES, dtype=jnp.float32)     # (T,10,10,17)
    text = jax.random.normal(ktxt, (T, L_TOK, TXT_DIM), jnp.float32)         # (T,8,768)
    actions = jax.random.randint(kact, (T,), 0, NUM_ACTIONS)                 # (T,)
    h0 = 0.1 * jax.random.normal(kst, (1, HIDDEN), jnp.float32)
    c0 = 0.1 * jax.random.normal(jax.random.fold_in(kst, 1), (1, HIDDEN), jnp.float32)

    params = make_params(kpar)
    slab = fuse_params(params)

    logits, (h_new, c_new) = world_model_forward(multilabel, text, actions, h0, c0, slab)
    jax.block_until_ready((logits, h_new, c_new))

    ref_logits, (ref_h, ref_c) = reference_forward(multilabel, text, actions, (h0, c0), params)

    assert logits.shape == (T, H, W, NUM_CLASSES)
    assert h_new.shape == (1, HIDDEN) and c_new.shape == (1, HIDDEN)
    # bf16 weights / text path (f32 accumulation) -> loose tolerance vs f32 reference.
    assert np.allclose(np.asarray(logits), np.asarray(ref_logits), atol=5e-2, rtol=5e-2)
    assert np.allclose(np.asarray(h_new), np.asarray(ref_h), atol=5e-2, rtol=5e-2)
    assert np.allclose(np.asarray(c_new), np.asarray(ref_c), atol=5e-2, rtol=5e-2)

    print("KERNEL_OK")
</pallas_src>

<mosaic_0001>
module attributes {stable_mosaic.version = 11 : i64} {
  func.func @world_model_kernel(%arg0: i32, %arg1: memref<4xi32, #tpu.memory_space<smem>>, %arg2: memref<1x104x24xbf16, #tpu.memory_space<vmem>>, %arg3: memref<1x8x768xbf16, #tpu.memory_space<vmem>>, %arg4: memref<1x128xf32, #tpu.memory_space<vmem>>, %arg5: memref<1336x128xbf16, #tpu.memory_space<vmem>>, %arg6: memref<1x104x128xf32, #tpu.memory_space<vmem>>, %arg7: memref<1x128xf32, #tpu.memory_space<vmem>>) attributes {dimension_semantics = [#tpu.dimension_semantics<arbitrary>], iteration_bounds = array<i64: 4>, scalar_prefetch = 1 : i64, scratch_operands = 0 : i64, tpu.core_type = #tpu.core_type<tc>, window_params = [{transform_indices = @transform_0, window_bounds = array<i64: 1, 104, 24>}, {transform_indices = @transform_1, window_bounds = array<i64: 1, 8, 768>}, {pipeline_mode = #tpu.pipeline_mode<synchronous>, transform_indices = @transform_2, window_bounds = array<i64: 1, 128>}, {pipeline_mode = #tpu.pipeline_mode<synchronous>, transform_indices = @transform_3, window_bounds = array<i64: 1336, 128>}, {transform_indices = @transform_4, window_bounds = array<i64: 1, 104, 128>}, {pipeline_mode = #tpu.pipeline_mode<synchronous>, transform_indices = @transform_5, window_bounds = array<i64: 1, 128>}]} {
    %c0_i32 = arith.constant 0 : i32
    %0 = arith.cmpi eq, %arg0, %c0_i32 : i32
    %1 = arith.extui %0 : i1 to i32
    %c0_i32_0 = arith.constant 0 : i32
    %2 = arith.cmpi ne, %1, %c0_i32_0 : i32
    scf.if %2 {
      %c0_40 = arith.constant 0 : index
      %c0_41 = arith.constant 0 : index
      %95 = vector.load %arg4[%c0_40, %c0_41] : memref<1x128xf32, #tpu.memory_space<vmem>>, vector<1x128xf32>
      %c0_42 = arith.constant 0 : index
      %c0_43 = arith.constant 0 : index
      %96 = vector.load %arg7[%c0_42, %c0_43] : memref<1x128xf32, #tpu.memory_space<vmem>>, vector<1x128xf32>
      tpu.vector_store %arg7[%c0_42, %c0_43], %95 {strides = array<i32>} : memref<1x128xf32, #tpu.memory_space<vmem>>, vector<1x128xf32>,
    } else {
    }
    %c0 = arith.constant 0 : index
    %c0_1 = arith.constant 0 : index
    %3 = vector.load %arg7[%c0, %c0_1] : memref<1x128xf32, #tpu.memory_space<vmem>>, vector<1x128xf32>
    %c0_2 = arith.constant 0 : index
    %c0_3 = arith.constant 0 : index
    %c0_4 = arith.constant 0 : index
    %4 = vector.load %arg3[%c0_2, %c0_3, %c0_4] : memref<1x8x768xbf16, #tpu.memory_space<vmem>>, vector<1x8x768xbf16>
    %5 = vector.shape_cast %4 : vector<1x8x768xbf16> to vector<8x768xbf16>
    %c0_5 = arith.constant 0 : index
    %c0_6 = arith.constant 0 : index
    %6 = vector.load %arg5[%c0_5, %c0_6] : memref<1336x128xbf16, #tpu.memory_space<vmem>>, vector<768x128xbf16>
    %cst = arith.constant dense<0.000000e+00> : vector<8x128xf32>
    %7 = tpu.matmul %5, %6, %cst {dimension_numbers = #tpu.dot_dimension_numbers<[1], [0], [0], [1], [0, 0, 1, 1], [], []>} : vector<8x768xbf16>, vector<768x128xbf16>, vector<8x128xf32> -> vector<8x128xf32>
    %8 = vector.extract_strided_slice %7 {offsets = [0, 32], sizes = [8, 1], strides = [1, 1]} : vector<8x128xf32> to vector<8x1xf32>
    %cst_7 = arith.constant dense<0xFF800000> : vector<1xf32>
    %9 = vector.multi_reduction <maximumf>, %8, %cst_7 [0] : vector<8x1xf32> to vector<1xf32>
    %10 = vector.shape_cast %9 : vector<1xf32> to vector<1x1xf32>
    %11 = vector.broadcast %10 : vector<1x1xf32> to vector<8x1xf32>
    %12 = arith.subf %8, %11 : vector<8x1xf32>
    %13 = math.exp %12 : vector<8x1xf32>
    %cst_8 = arith.constant dense<0.000000e+00> : vector<1xf32>
    %14 = vector.multi_reduction <add>, %13, %cst_8 [0] : vector<8x1xf32> to vector<1xf32>
    %15 = vector.shape_cast %14 : vector<1xf32> to vector<1x1xf32>
    %16 = vector.broadcast %15 : vector<1x1xf32> to vector<8x1xf32>
    %17 = arith.divf %13, %16 : vector<8x1xf32>
    %cst_9 = arith.constant 1.000000e+00 : f32
    %18 = vector.broadcast %cst_9 : f32 to vector<1x8xf32>
    %19 = vector.broadcast %17 : vector<8x1xf32> to vector<8x128xf32>
    %20 = arith.mulf %19, %7 : vector<8x128xf32>
    %cst_10 = arith.constant dense<0.000000e+00> : vector<1x128xf32>
    %21 = tpu.matmul %18, %20, %cst_10 {dimension_numbers = #tpu.dot_dimension_numbers<[1], [0], [0], [1], [0, 0, 1, 1], [], []>} : vector<1x8xf32>, vector<8x128xf32>, vector<1x128xf32> -> vector<1x128xf32>
    %c0_11 = arith.constant 0 : index
    %c0_12 = arith.constant 0 : index
    %c0_13 = arith.constant 0 : index
    %22 = vector.load %arg2[%c0_11, %c0_12, %c0_13] : memref<1x104x24xbf16, #tpu.memory_space<vmem>>, vector<1x104x24xbf16>
    %23 = vector.shape_cast %22 : vector<1x104x24xbf16> to vector<104x24xbf16>
    %c768 = arith.constant 768 : index
    %c0_14 = arith.constant 0 : index
    %24 = vector.load %arg5[%c768, %c0_14] : memref<1336x128xbf16, #tpu.memory_space<vmem>>, vector<24x128xbf16>
    %cst_15 = arith.constant dense<0.000000e+00> : vector<104x128xf32>
    %25 = tpu.matmul %23, %24, %cst_15 {dimension_numbers = #tpu.dot_dimension_numbers<[1], [0], [0], [1], [0, 0, 1, 1], [], []>} : vector<104x24xbf16>, vector<24x128xbf16>, vector<104x128xf32> -> vector<104x128xf32>
    %26 = vector.broadcast %21 : vector<1x128xf32> to vector<104x128xf32>
    %27 = arith.addf %25, %26 : vector<104x128xf32>
    %c792 = arith.constant 792 : index
    %c0_16 = arith.constant 0 : index
    %28 = vector.load %arg5[%c792, %c0_16] : memref<1336x128xbf16, #tpu.memory_space<vmem>>, vector<128x128xbf16>
    %cst_17 = arith.constant dense<0.000000e+00> : vector<104x128xf32>
    %29 = tpu.matmul %27, %28, %cst_17 {dimension_numbers = #tpu.dot_dimension_numbers<[1], [0], [0], [1], [0, 0, 1, 1], [], []>} : vector<104x128xf32>, vector<128x128xbf16>, vector<104x128xf32> -> vector<104x128xf32>
    %c920 = arith.constant 920 : index
    %c0_18 = arith.constant 0 : index
    %30 = vector.load %arg5[%c920, %c0_18] : memref<1336x128xbf16, #tpu.memory_space<vmem>>, vector<1x128xbf16>
    %31 = arith.extf %30 : vector<1x128xbf16> to vector<1x128xf32>
    %32 = vector.broadcast %31 : vector<1x128xf32> to vector<104x128xf32>
    %33 = arith.addf %29, %32 : vector<104x128xf32>
    %cst_19 = arith.constant 0.000000e+00 : f32
    %34 = vector.broadcast %cst_19 : f32 to vector<104x128xf32>
    %35 = arith.maximumf %33, %34 : vector<104x128xf32>
    %36 = tpu.iota {dimensions = array<i32: 1>} : vector<1x104xi32>
    %c100_i32 = arith.constant 100 : i32
    %37 = vector.broadcast %c100_i32 : i32 to vector<1x104xi32>
    %38 = arith.cmpi slt, %36, %37 : vector<1x104xi32>
    %cst_20 = arith.constant 0.00999999977 : f32
    %cst_21 = arith.constant 0.000000e+00 : f32
    %39 = vector.broadcast %cst_20 : f32 to vector<1x104xf32>
    %40 = vector.broadcast %cst_21 : f32 to vector<1x104xf32>
    %41 = arith.select %38, %39, %40 : vector<1x104xi1>, vector<1x104xf32>
    %cst_22 = arith.constant dense<0.000000e+00> : vector<1x128xf32>
    %42 = tpu.matmul %41, %35, %cst_22 {dimension_numbers = #tpu.dot_dimension_numbers<[1], [0], [0], [1], [0, 0, 1, 1], [], []>} : vector<1x104xf32>, vector<104x128xf32>, vector<1x128xf32> -> vector<1x128xf32>
    %43 = tpu.iota {dimensions = array<i32: 1>} : vector<1x128xi32>
    %44 = arith.index_cast %arg0 : i32 to index
    %45 = memref.load %arg1[%44] : memref<4xi32, #tpu.memory_space<smem>>
    %c32_i32 = arith.constant 32 : i32
    %46 = arith.addi %c32_i32, %45 : i32
    %47 = vector.broadcast %46 : i32 to vector<1x128xi32>
    %48 = arith.cmpi eq, %43, %47 : vector<1x128xi32>
    %49 = arith.extui %48 : vector<1x128xi1> to vector<1x128xi32>
    %50 = arith.sitofp %49 : vector<1x128xi32> to vector<1x128xf32>
    %51 = arith.addf %42, %50 : vector<1x128xf32>
    %52 = arith.addf %51, %3 : vector<1x128xf32>
    %c928 = arith.constant 928 : index
    %c0_23 = arith.constant 0 : index
    %53 = vector.load %arg5[%c928, %c0_23] : memref<1336x128xbf16, #tpu.memory_space<vmem>>, vector<128x128xbf16>
    %cst_24 = arith.constant dense<0.000000e+00> : vector<1x128xf32>
    %54 = tpu.matmul %52, %53, %cst_24 {dimension_numbers = #tpu.dot_dimension_numbers<[1], [0], [0], [1], [0, 0, 1, 1], [], []>} : vector<1x128xf32>, vector<128x128xbf16>, vector<1x128xf32> -> vector<1x128xf32>
    %c1056 = arith.constant 1056 : index
    %c0_25 = arith.constant 0 : index
    %55 = vector.load %arg5[%c1056, %c0_25] : memref<1336x128xbf16, #tpu.memory_space<vmem>>, vector<1x128xbf16>
    %56 = arith.extf %55 : vector<1x128xbf16> to vector<1x128xf32>
    %57 = arith.addf %54, %56 : vector<1x128xf32>
    %58 = vector.extract_strided_slice %57 {offsets = [0, 0], sizes = [1, 96], strides = [1, 1]} : vector<1x128xf32> to vector<1x96xf32>
    %59 = arith.negf %58 : vector<1x96xf32>
    %60 = math.exp %59 : vector<1x96xf32>
    %cst_26 = arith.constant 1.000000e+00 : f32
    %61 = vector.broadcast %cst_26 : f32 to vector<1x96xf32>
    %62 = arith.addf %61, %60 : vector<1x96xf32>
    %63 = arith.divf %61, %62 : vector<1x96xf32>
    %64 = vector.extract_strided_slice %57 {offsets = [0, 96], sizes = [1, 32], strides = [1, 1]} : vector<1x128xf32> to vector<1x32xf32>
    %65 = math.tanh %64 : vector<1x32xf32>
    %66 = vector.extract_strided_slice %63 {offsets = [0, 0], sizes = [1, 32], strides = [1, 1]} : vector<1x96xf32> to vector<1x32xf32>
    %67 = vector.extract_strided_slice %63 {offsets = [0, 32], sizes = [1, 32], strides = [1, 1]} : vector<1x96xf32> to vector<1x32xf32>
    %68 = vector.extract_strided_slice %63 {offsets = [0, 64], sizes = [1, 32], strides = [1, 1]} : vector<1x96xf32> to vector<1x32xf32>
    %69 = vector.extract_strided_slice %3 {offsets = [0, 96], sizes = [1, 32], strides = [1, 1]} : vector<1x128xf32> to vector<1x32xf32>
    %70 = arith.mulf %67, %69 : vector<1x32xf32>
    %71 = arith.mulf %66, %65 : vector<1x32xf32>
    %72 = arith.addf %70, %71 : vector<1x32xf32>
    %73 = math.tanh %72 : vector<1x32xf32>
    %74 = arith.mulf %68, %73 : vector<1x32xf32>
    %cst_27 = arith.constant 0.000000e+00 : f32
    %75 = vector.broadcast %cst_27 : f32 to vector<1x64xf32>
    %76 = tpu.concatenate %75, %74, %72 in 1 : vector<1x64xf32>, vector<1x32xf32>, vector<1x32xf32> -> vector<1x128xf32>
    %c0_28 = arith.constant 0 : index
    %c0_29 = arith.constant 0 : index
    %77 = vector.load %arg7[%c0_28, %c0_29] : memref<1x128xf32, #tpu.memory_space<vmem>>, vector<1x128xf32>
    tpu.vector_store %arg7[%c0_28, %c0_29], %76 {strides = array<i32>} : memref<1x128xf32, #tpu.memory_space<vmem>>, vector<1x128xf32>,
    %c1064 = arith.constant 1064 : index
    %c0_30 = arith.constant 0 : index
    %78 = vector.load %arg5[%c1064, %c0_30] : memref<1336x128xbf16, #tpu.memory_space<vmem>>, vector<32x128xbf16>
    %cst_31 = arith.constant dense<0.000000e+00> : vector<1x128xf32>
    %79 = tpu.matmul %74, %78, %cst_31 {dimension_numbers = #tpu.dot_dimension_numbers<[1], [0], [0], [1], [0, 0, 1, 1], [], []>} : vector<1x32xf32>, vector<32x128xbf16>, vector<1x128xf32> -> vector<1x128xf32>
    %c1096 = arith.constant 1096 : index
    %c0_32 = arith.constant 0 : index
    %80 = vector.load %arg5[%c1096, %c0_32] : memref<1336x128xbf16, #tpu.memory_space<vmem>>, vector<104x128xbf16>
    %81 = arith.extf %80 : vector<104x128xbf16> to vector<104x128xf32>
    %82 = vector.broadcast %79 : vector<1x128xf32> to vector<104x128xf32>
    %83 = arith.addf %82, %81 : vector<104x128xf32>
    %cst_33 = arith.constant 0.000000e+00 : f32
    %84 = vector.broadcast %cst_33 : f32 to vector<104x128xf32>
    %85 = arith.maximumf %83, %84 : vector<104x128xf32>
    %c1200 = arith.constant 1200 : index
    %c0_34 = arith.constant 0 : index
    %86 = vector.load %arg5[%c1200, %c0_34] : memref<1336x128xbf16, #tpu.memory_space<vmem>>, vector<128x128xbf16>
    %cst_35 = arith.constant dense<0.000000e+00> : vector<104x128xf32>
    %87 = tpu.matmul %85, %86, %cst_35 {dimension_numbers = #tpu.dot_dimension_numbers<[1], [0], [0], [1], [0, 0, 1, 1], [], []>} : vector<104x128xf32>, vector<128x128xbf16>, vector<104x128xf32> -> vector<104x128xf32>
    %c1328 = arith.constant 1328 : index
    %c0_36 = arith.constant 0 : index
    %88 = vector.load %arg5[%c1328, %c0_36] : memref<1336x128xbf16, #tpu.memory_space<vmem>>, vector<1x128xbf16>
    %89 = arith.extf %88 : vector<1x128xbf16> to vector<1x128xf32>
    %90 = vector.broadcast %89 : vector<1x128xf32> to vector<104x128xf32>
    %91 = arith.addf %87, %90 : vector<104x128xf32>
    %c0_37 = arith.constant 0 : index
    %c0_38 = arith.constant 0 : index
    %c0_39 = arith.constant 0 : index
    %92 = vector.load %arg6[%c0_37, %c0_38, %c0_39] : memref<1x104x128xf32, #tpu.memory_space<vmem>>, vector<1x104x128xf32>
    %93 = vector.shape_cast %92 : vector<1x104x128xf32> to vector<104x128xf32>
    %94 = vector.shape_cast %91 : vector<104x128xf32> to vector<1x104x128xf32>
    tpu.vector_store %arg6[%c0_37, %c0_38, %c0_39], %94 {strides = array<i32>} : memref<1x104x128xf32, #tpu.memory_space<vmem>>, vector<1x104x128xf32>,
    return
  }
  func.func @transform_0(%arg0: i32, %arg1: memref<4xi32, #tpu.memory_space<smem>>) -> (i32, i32, i32) {
    %c0_i32 = arith.constant 0 : i32
    %c0_i32_0 = arith.constant 0 : i32
    %c0_i32_1 = arith.constant 0 : i32
    return %arg0, %c0_i32, %c0_i32_0 : i32, i32, i32
  }
  func.func @transform_1(%arg0: i32, %arg1: memref<4xi32, #tpu.memory_space<smem>>) -> (i32, i32, i32) {
    %c0_i32 = arith.constant 0 : i32
    %c0_i32_0 = arith.constant 0 : i32
    %c0_i32_1 = arith.constant 0 : i32
    return %arg0, %c0_i32, %c0_i32_0 : i32, i32, i32
  }
  func.func @transform_2(%arg0: i32, %arg1: memref<4xi32, #tpu.memory_space<smem>>) -> (i32, i32) {
    %c0_i32 = arith.constant 0 : i32
    %c0_i32_0 = arith.constant 0 : i32
    %c0_i32_1 = arith.constant 0 : i32
    return %c0_i32, %c0_i32_0 : i32, i32
  }
  func.func @transform_3(%arg0: i32, %arg1: memref<4xi32, #tpu.memory_space<smem>>) -> (i32, i32) {
    %c0_i32 = arith.constant 0 : i32
    %c0_i32_0 = arith.constant 0 : i32
    %c0_i32_1 = arith.constant 0 : i32
    return %c0_i32, %c0_i32_0 : i32, i32
  }
  func.func @transform_4(%arg0: i32, %arg1: memref<4xi32, #tpu.memory_space<smem>>) -> (i32, i32, i32) {
    %c0_i32 = arith.constant 0 : i32
    %c0_i32_0 = arith.constant 0 : i32
    %c0_i32_1 = arith.constant 0 : i32
    return %arg0, %c0_i32, %c0_i32_0 : i32, i32, i32
  }
  func.func @transform_5(%arg0: i32, %arg1: memref<4xi32, #tpu.memory_space<smem>>) -> (i32, i32) {
    %c0_i32 = arith.constant 0 : i32
    %c0_i32_0 = arith.constant 0 : i32
    %c0_i32_1 = arith.constant 0 : i32
    return %c0_i32, %c0_i32_0 : i32, i32
  }
}

</mosaic_0001>

<bundles_post_ra>
// kernel: _forward_impl.1
= control target key start
LH: loop header
LB: loop body
LE: loop exit
PB: predicated region body
PF: predicated region fallthrough
CT: control target
= control target key end

     0   :  { %s3038_s0 = inlined_call_operand.vmem [shape: s32[4], index: 0, kind: input, shape index: {}]   ;;  %s3039_s1 = inlined_call_operand.vmem [shape: bf16[4,104,24], index: 1, kind: input, shape index: {}]   ;;  %s3040_s2 = inlined_call_operand.vmem [shape: bf16[4,8,768], index: 2, kind: input, shape index: {}]   ;;  %s3041_s3 = inlined_call_operand.vmem [shape: f32[1,128], index: 3, kind: input, shape index: {}]   ;;  %s3042_s4 = inlined_call_operand.vmem [shape: bf16[1336,128], index: 4, kind: input, shape index: {}]   ;;  %s3043_s5 = inlined_call_operand.vmem [shape: f32[4,104,128], index: 5, kind: output, shape index: {0}]   ;;  %s3044_s6 = inlined_call_operand.vmem [shape: f32[1,128], index: 6, kind: output, shape index: {1}]  }
   0x1   :  { %s12_s23 = sshll.u32 %s3038_s0, 4  ;;  %s13_s23 = int_to_ptr.vmem [resolvable:$true] %s12_s23 }
   0x2   :  { %s2452_s24 = scalar_lea.vmem %s13_s23, 16  ;;  %p2457_p1 = scmp.lt.s32.totalorder %s13_s23, %s13_s23 }
   0x3   :  { %p2453_p0 = scmp.ne.s32.totalorder %s13_s23, %s2452_s24  ;;  %p2458_p2 = scmp.lt.s32.totalorder %s2452_s24, %s2452_s24 }
   0x5   :  { %p2459_p3 = por %p2458_p2, %p2457_p1 }
   0x7   :  { %p2460_p4 = pnand %p2459_p3, %p2453_p0 }
   0x9   :  { %2463 = shalt.err (!%p2460_p4)  }
   0xa   :  { %s2474_s25 = smov [#allocation3]  }
   0xb   :  { %15 = dma.vmem_to_smem %s13_s23, 16, %s2474_s25, [#allocation2] }
   0xc   :  { %2468 = dma.done.wait [#allocation2], 16 }
   0xd   :  { %2469 = vsyncadd [#allocation2], 4294967280 }
   0xe   :  { %17 = sfence }
   0xf   :  { %s2519_s26 = smov 0  }
  0x10 LB: > { %s2525_s0 = sadd.s32 4294967295, %s2472_s26   ;;  %p1847_p5 = scmp.ge.s32.totalorder %s2472_s26, 1  ;;  %s2472_s26 = sphi %s2519_s26, %s23_s26  }
  0x11   : > { %p202_p6 = scmp.lt.s32.totalorder %s2472_s26, 5 }
  0x13   : > { %p203_p7 = pnand %p1847_p5, %p202_p6 }
  0x14   : > { %p235_p8 = scmp.lt.s32.totalorder (!%p203_p7), %s2525_s0, 3  ;;  %p1851_p9 = scmp.ne.s32.totalorder (!%p203_p7), %s2525_s0, 0 }
  0x15   : > { %206 = sbr.rel (%p203_p7) target bundleno = 2287 (0x8ef), region = 36 }
  0x1a   : > { %s236_s27 = scalar_select %p235_p8, %s2525_s0, 3 }
  0x1c   : > { %s2332_s28 = smul.u32 52, %s236_s27 }
  0x1d   : > { %s2333_s29 = smul.u32 24, %s236_s27 }
  0x1e   : > { %s2534_s8 = scalar_lea.vmem %s3039_s1, %s2332_s28  ;;  %s2334_s9 = smul.u32 104, %s236_s27 }
  0x1f   : > { %s2539_s12 = scalar_lea.vmem %s3040_s2, %s2333_s29  ;;  %254 = sbr.rel (%p1851_p9) target bundleno = 38 (0x26), region = 40 }
  0x20   : > { %s2544_s15 = scalar_lea.vmem %s3043_s5, %s2334_s9 }
  0x24   : > { %v255_v0 = vld [vmem:[%s3041_s3] sm:$0x1] }
  0x25   : > { %256 = vst [vmem:[%s3044_s6] sm:$0x1] %v255_v0 }
  0x26 PF: > { %v2351_v1 = vld [vmem:[%s3042_s4 + $0x78] sm:$0xff]   ;;  %v2353_v3 = vld [vmem:[%s3042_s4 + $0x70] sm:$0xff]   ;;  %v2355_v5 = vld [vmem:[%s3042_s4 + $0x68] sm:$0xff]   ;;  %v2475_v58 = vmov 32   ;;  %vm970_vm0 = vcmask 1043456   ;;  %v2476_v60 = vmov 0.0  }
  0x27   : > { %v2352_v2 = vld [vmem:[%s3042_s4 + $0x38] sm:$0xff]   ;;  %1985 = vmatprep.subr.bf16.mxu1 %v2351_v1  ;;  %v2354_v4 = vld [vmem:[%s3042_s4 + $0x30] sm:$0xff]   ;;  %v2356_v6 = vld [vmem:[%s3042_s4 + $0x28] sm:$0xff]   ;;  %2350 = vset.pattern.permute.xlu0 %v2475_v58  ;;  %vm2477_vm1 = vmmov 0   ;;  %vm948_vm2 = vcmask 195584   ;;  %vm786_vm3 = vcmask 269568  }
  0x28   : > { %1986 = vmatpush3.bf16.msra.mxu1 %v2352_v2  ;;  %v2357_v7 = vld [vmem:[%s3042_s4 + $0x60] sm:$0xff]   ;;  %v2359_v9 = vld [vmem:[%s3042_s4 + $0x58] sm:$0xff]   ;;  %v2361_v12 = vld [vmem:[%s3042_s4 + $0x50] sm:$0xff]   ;;  %vm812_vm4 = vcmask 64512   ;;  %vm1253_vm6 = vcmask 850944   ;;  %s2479_s10 = smov 64  }
  0x29   : > { %1987 = vmatprep.subr.bf16.mxu1 %v2353_v3  ;;  %v2358_v8 = vld [vmem:[%s3042_s4 + $0x20] sm:$0xff]   ;;  %v2360_v10 = vld [vmem:[%s3042_s4 + $0x18] sm:$0xff]   ;;  %v2362_v13 = vld [vmem:[%s3042_s4 + $0x10] sm:$0xff]   ;;  %vm1468_vm8 = vcmask 523264   ;;  %vm1470_vm9 = vcmask 785408   ;;  %vm1492_vm10 = vcmask 261120  }
  0x2a   : > { %v2366_v11 = vld [vmem:[%s3042_s4 + $0x178] sm:$0xff]   ;;  %v258_v15 = vld [vmem:[%s2539_s12] sm:$0xff]  ;;  %v2363_v16 = vld [vmem:[%s3042_s4 + $0x48] sm:$0xff]  }
  0x2b   : > { %2029 = vmatprep.subr.bf16.mxu0 %v2366_v11  ;;  %v2368_v14 = vld [vmem:[%s3042_s4 + $0x138] sm:$0xff]   ;;  %v1853_v17 = vcombine.high %v258_v15, %v258_v15  ;;  %v2372_v18 = vld [vmem:[%s3042_s4 + $0x170] sm:$0xff]   ;;  %v2364_v19 = vld [vmem:[%s3042_s4 + $0x8] sm:$0xff]   ;;  %v1852_v28 = vcombine.low %v258_v15, %v258_v15 }
  0x2c   : > { %1988 = vmatpush3.bf16.msra.mxu1 %v2354_v4  ;;  %2030 = vmatpush3.bf16.msra.mxu0 %v2368_v14  ;;  %v2374_v20 = vld [vmem:[%s3042_s4 + $0x130] sm:$0xff]   ;;  %v2365_v21 = vld [vmem:[%s3042_s4 + $0x40] sm:$0xff]   ;;  %v2376_v22 = vld [vmem:[%s3042_s4 + $0x168] sm:$0xff]  }
  0x2d   : > { %1989 = vmatprep.subr.bf16.mxu1 %v2355_v5  ;;  %698 = vmatprep.mubr.bf16.mxu1 %v1853_v17  ;;  %v2367_v23 = vld [vmem:[%s3042_s4] sm:$0xff]   ;;  %v2378_v24 = vld [vmem:[%s3042_s4 + $0x128] sm:$0xff]   ;;  %v2371_v25 = vld [vmem:[%s3042_s4 + $0xf8] sm:$0xff]  }
  0x2e   : > { %2031 = vmatprep.subr.bf16.mxu0 %v2372_v18  ;;  %v2380_v26 = vld [vmem:[%s3042_s4 + $0x160] sm:$0xff]   ;;  %v2373_v27 = vld [vmem:[%s3042_s4 + $0xb8] sm:$0xff]   ;;  %v2375_v30 = vld [vmem:[%s3042_s4 + $0xf0] sm:$0xff]  }
  0x2f   : > { %v2382_v29 = vld [vmem:[%s3042_s4 + $0x120] sm:$0xff]   ;;  %v2384_v31 = vld [vmem:[%s3042_s4 + $0x158] sm:$0xff]   ;;  %v2377_v32 = vld [vmem:[%s3042_s4 + $0xb0] sm:$0xff]  }
  0x30   : > { %1990 = vmatpush3.bf16.msra.mxu1 %v2356_v6  ;;  %2032 = vmatpush3.bf16.msra.mxu0 %v2374_v20  ;;  %v2386_v33 = vld [vmem:[%s3042_s4 + $0x118] sm:$0xff]   ;;  %v2379_v34 = vld [vmem:[%s3042_s4 + $0xe8] sm:$0xff]   ;;  %v2388_v35 = vld [vmem:[%s3042_s4 + $0x150] sm:$0xff]  }
  0x31   : > { %1991 = vmatprep.subr.bf16.mxu1 %v2357_v7  ;;  %2033 = vmatprep.subr.bf16.mxu0 %v2376_v22  ;;  %v2381_v36 = vld [vmem:[%s3042_s4 + $0xa8] sm:$0xff]   ;;  %v2390_v37 = vld [vmem:[%s3042_s4 + $0x110] sm:$0xff]   ;;  %v2383_v38 = vld [vmem:[%s3042_s4 + $0xe0] sm:$0xff]  }
  0x32   : > { %v2392_v39 = vld [vmem:[%s3042_s4 + $0x148] sm:$0xff]   ;;  %v2385_v40 = vld [vmem:[%s3042_s4 + $0xa0] sm:$0xff]   ;;  %v2387_v42 = vld [vmem:[%s3042_s4 + $0xd8] sm:$0xff]  }
  0x33   : > { %v2394_v41 = vld [vmem:[%s3042_s4 + $0x108] sm:$0xff]   ;;  %v2396_v43 = vld [vmem:[%s3042_s4 + $0x140] sm:$0xff]   ;;  %v260_v45 = vld [vmem:[%s2539_s12 + $0x10] sm:$0xff] }
  0x34   : > { %1992 = vmatpush3.bf16.msra.mxu1 %v2358_v8  ;;  %2034 = vmatpush3.bf16.msra.mxu0 %v2378_v24  ;;  %v2398_v44 = vld [vmem:[%s3042_s4 + $0x100] sm:$0xff]   ;;  %v2389_v46 = vld [vmem:[%s3042_s4 + $0x98] sm:$0xff]   ;;  %v1856_v47 = vcombine.low %v260_v45, %v260_v45  ;;  %v1857_v48 = vcombine.high %v260_v45, %v260_v45  ;;  %v2391_v49 = vld [vmem:[%s3042_s4 + $0xd0] sm:$0xff]  }
  0x35   : > { %1993 = vmatprep.subr.bf16.mxu1 %v2359_v9  ;;  %2035 = vmatprep.subr.bf16.mxu0 %v2380_v26  ;;  %v259_v50 = vld [vmem:[%s2539_s12 + $0x8] sm:$0xff]  ;;  %v2393_v51 = vld [vmem:[%s3042_s4 + $0x90] sm:$0xff]   ;;  %v2401_v55 = vld [vmem:[%s3042_s4 + $0xc0] sm:$0xff]   ;;  %s1247_s12 = sld [smem:[#allocation3 + %s2525_s0]]  ;;  %s2480_s0 = smov 32  }
  0x36   : > { %778 = vmatprep.mubr.bf16.mxu0 %v1857_v48  ;;  %v1855_v52 = vcombine.high %v259_v50, %v259_v50  ;;  %v2395_v53 = vld [vmem:[%s3042_s4 + $0xc8] sm:$0xff]   ;;  %v2402_v56 = vld [vmem:[%s3042_s4 + $0x80] sm:$0xff]   ;;  %v1854_v57 = vcombine.low %v259_v50, %v259_v50  ;;  %v2409_v1 = vld [vmem:[%s2534_s8 + $0x10] sm:$0xff]  }
  0x37   : > { %v2397_v54 = vld [vmem:[%s3042_s4 + $0x88] sm:$0xff]   ;;  %v2406_v62 = vld [vmem:[%s3042_s4 + $0x180] sm:$0xff]   ;;  %v2410_v4 = vld [vmem:[%s2534_s8 + $0x18] sm:$0xff]  }
  0x38   : > { %1994 = vmatpush3.bf16.msra.mxu1 %v2360_v10  ;;  %2036 = vmatpush3.bf16.msra.mxu0 %v2382_v29  ;;  %v2405_v59 = vld [vmem:[%s3042_s4 + $0x188] ss:$0 sps:$4 sm:$0xff]   ;;  %v2407_v63 = vld [vmem:[%s2534_s8] sm:$0xff]  }
  0x39   : > { %1995 = vmatprep.subr.bf16.mxu1 %v2361_v12  ;;  %2037 = vmatprep.subr.bf16.mxu0 %v2384_v31  ;;  %v972_v61 = vsel %vm970_vm0, %v2405_v59, 0  ;;  %v2408_v0 = vld [vmem:[%s2534_s8 + $0x8] sm:$0xff]   ;;  %v2411_v7 = vld [vmem:[%s2534_s8 + $0x20] sm:$0xff]  }
  0x3a   : > { %v2412_v10 = vld [vmem:[%s2534_s8 + $0x28] sm:$0xff]  }
  0x3b   : > { %s1248_s11 = sadd.s32 32, %s1247_s12 }
  0x3c   : > { %1996 = vmatpush3.bf16.msra.mxu1 %v2362_v13  ;;  %2038 = vmatpush3.bf16.msra.mxu0 %v2386_v33 }
  0x3d   : > { %1997 = vmatprep.subr.bf16.mxu1 %v2363_v16  ;;  %2039 = vmatprep.subr.bf16.mxu0 %v2388_v35 }
  0x40   : > { %1998 = vmatpush3.bf16.msra.mxu1 %v2364_v19  ;;  %2040 = vmatpush3.bf16.msra.mxu0 %v2390_v37 }
  0x41   : > { %1999 = vmatprep.subr.bf16.mxu1 %v2365_v21  ;;  %2041 = vmatprep.subr.bf16.mxu0 %v2392_v39 }
  0x44   : > { %2000 = vmatpush3.bf16.msra.mxu1 %v2367_v23  ;;  %2042 = vmatpush3.bf16.msra.mxu0 %v2394_v41  ;;  %v2413_v41 = vld [vmem:[%s2534_s8 + $0x30] ss:$0 sps:$4 sm:$0xff]  }
  0x45   : > { %2007 = vmatprep.subr.bf16.mxu1 %v2371_v25  ;;  %2043 = vmatprep.subr.bf16.mxu0 %v2396_v43 }
  0x47   : > { %699 = vmatmul.mubr.bf16.vlgmr.msra.gmra.mxu1 %v1852_v28 }
  0x48   : > { %2008 = vmatpush3.bf16.msra.mxu1 %v2373_v27  ;;  %2044 = vmatpush3.bf16.msra.mxu0 %v2398_v44 }
  0x49   : > { %2009 = vmatprep.subr.bf16.mxu1 %v2375_v30  ;;  %738 = vmatprep.mubr.bf16.mxu1 %v1855_v52 }
  0x4a   : > { %2130 = vmatprep.subr.mxu0 %v2476_v60 }
  0x4b   : > { %779 = vmatmul.mubr.bf16.vlgmr.msra.gmra.mxu0 %v1856_v47 }
  0x4c   : > { %2010 = vmatpush3.bf16.msra.mxu1 %v2377_v32  ;;  %2132 = vmatprep.mubr.msk.f32.mxu0 %vm2477_vm1, %v2476_v60 }
  0x4d   : > { %2011 = vmatprep.subr.bf16.mxu1 %v2379_v34 }
  0x50   : > { %2012 = vmatpush3.bf16.msra.mxu1 %v2381_v36 }
  0x51   : > { %2013 = vmatprep.subr.bf16.mxu1 %v2383_v38 }
  0x54   : > { %2014 = vmatpush3.bf16.msra.mxu1 %v2385_v40 }
  0x55   : > { %2015 = vmatprep.subr.bf16.mxu1 %v2387_v42 }
  0x58   : > { %2016 = vmatpush3.bf16.msra.mxu1 %v2389_v46 }
  0x59   : > { %2017 = vmatprep.subr.bf16.mxu1 %v2391_v49 }
  0x5c   : > { %2018 = vmatpush3.bf16.msra.mxu1 %v2393_v51 }
  0x5d   : > { %2019 = vmatprep.subr.bf16.mxu1 %v2395_v53 }
  0x60   : > { %2020 = vmatpush3.bf16.msra.mxu1 %v2397_v54 }
  0x61   : > { %2021 = vmatprep.subr.bf16.mxu1 %v2401_v55 }
  0x64   : > { %2022 = vmatpush3.bf16.msra.mxu1 %v2402_v56 }
  0x65   : > { %2135 = vmatprep.subr.bf16.mxu1 %v2476_v60 }
  0x67   : > { %739 = vmatmul.mubr.bf16.vlgmr.msra.gmra.mxu1 %v1854_v57 }
  0x68   : > { %2139 = vmatprep.mubr.msk.bf16.mxu1 %vm2477_vm1, %v2476_v60  ;;  %2136 = vmatpush3.bf16.msra.mxu1 %v972_v61 }
  0x69   : > { %2137 = vmatprep.subr.bf16.mxu1 %v2476_v60 }
  0x6c   : > { %2138 = vmatpush3.bf16.msra.mxu1 %v2406_v62 }
  0x6d   : > { %2222 = vmatprep.subr.mxu1 %v2476_v60 }
  0x6f   : > { %2140 = vmatmul.mubr.msk.bf16.vlgmr.msra.gmra.mxu1 %vm948_vm2, %v2407_v63 }
  0x70   : > { %2143 = vmatprep.mubr.msk.bf16.mxu1 %vm2477_vm1, %v2476_v60 }
  0x77   : > { %2144 = vmatmul.mubr.msk.bf16.gmra.mxu1 %vm948_vm2, %v2408_v0 }
  0x78   : > { %2147 = vmatprep.mubr.msk.bf16.mxu1 %vm2477_vm1, %v2476_v60 }
  0x7f   : > { %2148 = vmatmul.mubr.msk.bf16.gmra.mxu1 %vm948_vm2, %v2409_v1 }
  0x80   : > { %2151 = vmatprep.mubr.msk.bf16.mxu1 %vm2477_vm1, %v2476_v60 }
  0x87   : > { %2152 = vmatmul.mubr.msk.bf16.gmra.mxu1 %vm948_vm2, %v2410_v4 }
  0x88   : > { %2155 = vmatprep.mubr.msk.bf16.mxu1 %vm2477_vm1, %v2476_v60 }
  0x8f   : > { %2156 = vmatmul.mubr.msk.bf16.gmra.mxu1 %vm948_vm2, %v2411_v7  ;;  %v2415_v7 = vld [vmem:[%s3042_s4 + $0x1bc] sm:$0xff]  }
  0x90   : > { %2159 = vmatprep.mubr.msk.bf16.mxu1 %vm2477_vm1, %v2476_v60 }
  0x97   : > { %2160 = vmatmul.mubr.msk.bf16.gmra.mxu1 %vm948_vm2, %v2412_v10  ;;  %v2418_v10 = vld [vmem:[%s3042_s4 + $0x1a4] sm:$0xff]  }
  0x98   : > { %2163 = vmatprep.mubr.msk.bf16.mxu1 %vm2477_vm1, %v2476_v60 }
  0x9f   : > { %2164 = vmatmul.mubr.msk.bf16.gmra.mxu1 %vm948_vm2, %v2413_v41 }
  0xa0   : > { %2248 = vmatprep.mubr.msk.f32.mxu1 %vm2477_vm1, %v2476_v60 }
 0x107   : > { %v2001_v2 = vpop.f32.mrf.mxu1 }
 0x109   : > { %v2002_v3 = vpop.f32.mrf.mxu1 }
 0x10a   : > { %v2003_v15 = vadd.f32 %v2002_v3, %v2001_v2 }
 0x10b   : > { %v2004_v5 = vpop.f32.mrf.mxu1  ;;  %v2045_v8 = vpop.f32.mrf.mxu0 }
 0x10c   : > { %v2414_v5 = vld [vmem:[%s3042_s4 + $0x1c4] sm:$0xff]  }
 0x10d   : > { %v2005_v6 = vpop.f32.mrf.mxu1  ;;  %v2046_v9 = vpop.f32.mrf.mxu0 }
 0x10e   : > { %v2047_v18 = vadd.f32 %v2046_v9, %v2045_v8  ;;  %v2478_v6 = vmov 1.0   ;;  %v2416_v8 = vld [vmem:[%s3042_s4 + $0x1b4] sm:$0xff]   ;;  %v2417_v9 = vld [vmem:[%s3042_s4 + $0x1ac] sm:$0xff]  }
 0x10f   : > { %v2048_v11 = vpop.f32.mrf.mxu0 }
 0x110   : > { %v2419_v11 = vld [vmem:[%s3042_s4 + $0x19c] sm:$0xff]  }
 0x111   : > { %v2049_v12 = vpop.f32.mrf.mxu0 }
 0x112   : > { %v2420_v12 = vld [vmem:[%s3042_s4 + $0x194] sm:$0xff]  }
 0x127   : > { %v2023_v13 = vpop.f32.mrf.mxu1 }
 0x129   : > { %v2024_v14 = vpop.f32.mrf.mxu1 }
 0x12a   : > { %v2025_v16 = vadd.f32 %v2024_v14, %v2023_v13  ;;  %v2421_v13 = vld [vmem:[%s3042_s4 + $0x18c] sm:$0xff]  }
 0x12b   : > { %v2026_v17 = vpop.f32.mrf.mxu1 }
 0x12c   : > { %v741_v19 = vadd.f32 %v2025_v16, %v2003_v15 }
 0x12d   : > { %v2027_v20 = vpop.f32.mrf.mxu1 }
 0x12e   : > { %v781_v21 = vadd.f32 %v2047_v18, %v741_v19  ;;  %v902_v18 = vlaneseq }
 0x12f   : > { %v2742_v42 = vpop.f32.mrf.mxu1 }
 0x130   : > { %v787_v22 = vsel %vm786_vm3, %v781_v21, -inf  ;;  %v903_v19 = vshrl.u32 %v902_v18, 7 }
 0x131   : > { %v788_v23 = vrot.slane %v787_v22, 4  ;;  %v2141_v43 = vpop.f32.mrf.mxu1 }
 0x132   : > { %v2802_v20 = vsub.s32 0, %v903_v19 }
 0x133   : > { %v789_v24 = vmax.f32 %v787_v22, %v788_v23  ;;  %v2744_v44 = vpop.f32.mrf.mxu1 }
 0x135   : > { %v790_v25 = vrot.slane %v789_v24, 2  ;;  %v2142_v45 = vpop.f32.mrf.mxu1 }
 0x137   : > { %v791_v26 = vmax.f32 %v789_v24, %v790_v25  ;;  %v2746_v46 = vpop.f32.mrf.mxu1 }
 0x139   : > { %v792_v27 = vrot.slane %v791_v26, 1  ;;  %v2145_v47 = vpop.f32.mrf.mxu1 }
 0x13b   : > { %v793_v28 = vmax.f32 %v791_v26, %v792_v27  ;;  %v2748_v48 = vpop.f32.mrf.mxu1 }
 0x13d   : > { %v794_v29 = vsub.f32 %v781_v21, %v793_v28  ;;  %v2146_v49 = vpop.f32.mrf.mxu1 }
 0x13f   : > { %v795_v30 = vmul.f32 1.442695, %v794_v29  ;;  %v2750_v50 = vpop.f32.mrf.mxu1 }
 0x141   : > { %2440 = vpow2.f32 %v795_v30  ;;  %v2149_v51 = vpop.f32.mrf.mxu1 }
 0x143   : > { %v2752_v52 = vpop.f32.mrf.mxu1 }
 0x145   : > { %v2150_v53 = vpop.f32.mrf.mxu1 }
 0x147   : > { %v2754_v54 = vpop.f32.mrf.mxu1 }
 0x149   : > { %v2153_v55 = vpop.f32.mrf.mxu1 }
 0x14b   : > { %v2756_v56 = vpop.f32.mrf.mxu1 }
 0x14d   : > { %v2154_v57 = vpop.f32.mrf.mxu1 }
 0x14e   : > { %v2441_v31 = vpop.eup %2440  ;;  %v1078_v57 = vld [vmem:[%s3042_s4 + $0x1cc] sm:$0x1] }
 0x14f   : > { %v797_v32 = vsel %vm786_vm3, %v2441_v31, 0.0  ;;  %v2758_v58 = vpop.f32.mrf.mxu1 }
 0x150   : > { %v798_v33 = vrot.slane %v797_v32, 4 }
 0x151   : > { %v2157_v59 = vpop.f32.mrf.mxu1 }
 0x152   : > { %v799_v34 = vadd.f32 %v798_v33, %v797_v32 }
 0x153   : > { %v2760_v61 = vpop.f32.mrf.mxu1 }
 0x154   : > { %v800_v35 = vrot.slane %v799_v34, 2 }
 0x155   : > { %v2158_v62 = vpop.f32.mrf.mxu1 }
 0x156   : > { %v801_v36 = vadd.f32 %v800_v35, %v799_v34 }
 0x157   : > { %v2762_v63 = vpop.f32.mrf.mxu1 }
 0x158   : > { %v802_v37 = vrot.slane %v801_v36, 1 }
 0x159   : > { %v2161_v0 = vpop.f32.mrf.mxu1 }
 0x15a   : > { %v803_v38 = vadd.f32 %v802_v37, %v801_v36 }
 0x15b   : > { %v2764_v1 = vpop.f32.mrf.mxu1 }
 0x15c   : > { %2442 = vrcp.f32 %v803_v38 }
 0x15d   : > { %v2162_v2 = vpop.f32.mrf.mxu1 }
 0x15f   : > { %v1056_v14 = vpop.f32.mrf.mxu1 }
 0x161   : > { %v2165_v15 = vpop.f32.mrf.mxu1 }
 0x163   : > { %v1059_v16 = vpop.f32.mrf.mxu1 }
 0x165   : > { %v2166_v17 = vpop.f32.mrf.mxu1 }
 0x169   : > { %v2443_v39 = vpop.eup %2442 }
 0x16a   : > { %v805_v40 = vmul.f32 %v2443_v39, %v2441_v31 }
 0x16c   : > { %808 = vperm.xlu0 %2350, %v805_v40  }
 0x1e7   : > { %v809_v3 = vpop.permute.xlu0 %808 }
 0x1e8   : > { %v811_v4 = vmul.f32 %v809_v3, %v781_v21 }
 0x1ea   : > { %2131 = vmatpush3.msra.mxu0 %v811_v4 }
 0x1eb   : > { %2133 = vmatmul.mubr.msk.f32.vlgmr.msra.gmra.mxu0 %vm812_vm4, %v2478_v6  ;;  %2167 = vmatprep.subr.bf16.mxu0 %v2476_v60 }
 0x1ec   : > { %2168 = vmatpush3.bf16.msra.mxu0 %v2414_v5  ;;  %2183 = vmatprep.mubr.msk.f32.mxu0 %vm2477_vm1, %v2476_v60 }
 0x1ed   : > { %2169 = vmatprep.subr.bf16.mxu0 %v2476_v60 }
 0x1f0   : > { %2170 = vmatpush3.bf16.msra.mxu0 %v2415_v7 }
 0x1f1   : > { %2171 = vmatprep.subr.bf16.mxu0 %v2476_v60 }
 0x1f4   : > { %2172 = vmatpush3.bf16.msra.mxu0 %v2416_v8 }
 0x1f5   : > { %2173 = vmatprep.subr.bf16.mxu0 %v2476_v60 }
 0x1f8   : > { %2174 = vmatpush3.bf16.msra.mxu0 %v2417_v9 }
 0x1f9   : > { %2175 = vmatprep.subr.bf16.mxu0 %v2476_v60 }
 0x1fc   : > { %2176 = vmatpush3.bf16.msra.mxu0 %v2418_v10 }
 0x1fd   : > { %2177 = vmatprep.subr.bf16.mxu0 %v2476_v60 }
 0x200   : > { %2178 = vmatpush3.bf16.msra.mxu0 %v2419_v11 }
 0x201   : > { %2179 = vmatprep.subr.bf16.mxu0 %v2476_v60 }
 0x204   : > { %2180 = vmatpush3.bf16.msra.mxu0 %v2420_v12 }
 0x205   : > { %2181 = vmatprep.subr.bf16.mxu0 %v2476_v60 }
 0x208   : > { %2182 = vmatpush3.bf16.msra.mxu0 %v2421_v13 }
 0x209   : > { %2277 = vmatprep.subr.bf16.mxu0 %v2476_v60 }
 0x2ab   : > { %v882_v21 = vpop.f32.mrf.mxu0 }
 0x2ac   : > { %v905_v22 = vrot.slane %v882_v21, %v2802_v20 }
 0x2ad   : > { %v2134_v23 = vpop.f32.mrf.mxu0 }
 0x2ae   : > { %v1009_v24 = vadd.f32 %v2742_v42, %v905_v22  ;;  %v1012_v25 = vadd.f32 %v2744_v44, %v905_v22  ;;  %v1017_v26 = vadd.f32 %v2746_v46, %v905_v22  ;;  %v1020_v27 = vadd.f32 %v2748_v48, %v905_v22 }
 0x2af   : > { %v1025_v28 = vadd.f32 %v2750_v50, %v905_v22  ;;  %v1028_v29 = vadd.f32 %v2752_v52, %v905_v22  ;;  %v1033_v30 = vadd.f32 %v2754_v54, %v905_v22  ;;  %v1036_v31 = vadd.f32 %v2756_v56, %v905_v22 }
 0x2b0   : > { %2184 = vmatmul.mubr.f32.vlgmr.msra.gmra.mxu0 %v1009_v24  ;;  %v1041_v32 = vadd.f32 %v2758_v58, %v905_v22  ;;  %v1044_v33 = vadd.f32 %v2760_v61, %v905_v22  ;;  %v1049_v34 = vadd.f32 %v2762_v63, %v905_v22  ;;  %v1052_v35 = vadd.f32 %v2764_v1, %v905_v22 }
 0x2b1   : > { %2186 = vmatprep.mubr.msk.f32.mxu0 %vm2477_vm1, %v2476_v60  ;;  %v1057_v36 = vadd.f32 %v1056_v14, %v905_v22  ;;  %v1079_v61 = vunpack.c.l.bf16 %v1078_v57 }
 0x2b3   : > { %v1083_v0 = vrot.slane %v1079_v61, %v2802_v20 }
 0x2b4   : > { %2187 = vmatmul.mubr.f32.gmra.mxu0 %v1012_v25  ;;  %v1244_v25 = vand.u32 127, %v902_v18 }
 0x2b5   : > { %2189 = vmatprep.mubr.msk.f32.mxu0 %vm2477_vm1, %v2476_v60 }
 0x2b6   : > { %vm1245_vm5 = vcmp.lt.s32.totalorder %v1244_v25, 100 }
 0x2b7   : > { %v1246_v18 = vsel %vm1245_vm5, 0.01, %v2476_v60 }
 0x2b8   : > { %2190 = vmatmul.mubr.f32.gmra.mxu0 %v1017_v26 }
 0x2b9   : > { %2192 = vmatprep.mubr.msk.f32.mxu0 %vm2477_vm1, %v2476_v60 }
 0x2bc   : > { %2193 = vmatmul.mubr.f32.gmra.mxu0 %v1020_v27 }
 0x2bd   : > { %2195 = vmatprep.mubr.msk.f32.mxu0 %vm2477_vm1, %v2476_v60 }
 0x2c0   : > { %2196 = vmatmul.mubr.f32.gmra.mxu0 %v1025_v28 }
 0x2c1   : > { %2198 = vmatprep.mubr.msk.f32.mxu0 %vm2477_vm1, %v2476_v60 }
 0x2c4   : > { %2199 = vmatmul.mubr.f32.gmra.mxu0 %v1028_v29 }
 0x2c5   : > { %2201 = vmatprep.mubr.msk.f32.mxu0 %vm2477_vm1, %v2476_v60 }
 0x2c8   : > { %2202 = vmatmul.mubr.f32.gmra.mxu0 %v1033_v30 }
 0x2c9   : > { %2204 = vmatprep.mubr.msk.f32.mxu0 %vm2477_vm1, %v2476_v60 }
 0x2cc   : > { %2205 = vmatmul.mubr.f32.gmra.mxu0 %v1036_v31 }
 0x2cd   : > { %2207 = vmatprep.mubr.msk.f32.mxu0 %vm2477_vm1, %v2476_v60 }
 0x2d0   : > { %2208 = vmatmul.mubr.f32.gmra.mxu0 %v1041_v32  ;;  %v2422_v32 = vld [vmem:[%s3042_s4 + $0x208] sm:$0xff]  }
 0x2d1   : > { %2210 = vmatprep.mubr.msk.f32.mxu0 %vm2477_vm1, %v2476_v60 }
 0x2d4   : > { %2211 = vmatmul.mubr.f32.gmra.mxu0 %v1044_v33  ;;  %v2423_v33 = vld [vmem:[%s3042_s4 + $0x200] sm:$0xff]  }
 0x2d5   : > { %2213 = vmatprep.mubr.msk.f32.mxu0 %vm2477_vm1, %v2476_v60 }
 0x2d8   : > { %2214 = vmatmul.mubr.f32.gmra.mxu0 %v1049_v34  ;;  %v2424_v34 = vld [vmem:[%s3042_s4 + $0x1f8] sm:$0xff]  }
 0x2d9   : > { %2216 = vmatprep.mubr.msk.f32.mxu0 %vm2477_vm1, %v2476_v60 }
 0x2dc   : > { %2217 = vmatmul.mubr.f32.gmra.mxu0 %v1052_v35  ;;  %v2425_v35 = vld [vmem:[%s3042_s4 + $0x1f0] sm:$0xff]  }
 0x2dd   : > { %2219 = vmatprep.mubr.msk.f32.mxu0 %vm2477_vm1, %v2476_v60 }
 0x2e0   : > { %2220 = vmatmul.mubr.f32.gmra.mxu0 %v1057_v36  ;;  %v2426_v36 = vld [vmem:[%s3042_s4 + $0x1e8] sm:$0xff]  }
 0x2e1   : > { %2293 = vmatprep.mubr.msk.f32.mxu0 %vm2477_vm1, %v2476_v60 }
 0x370   : > { %v2843_v37 = vpop.f32.mrf.mxu0 }
 0x371   : > { %v1167_v28 = vadd.f32 %v2843_v37, %v1083_v0  ;;  %v2427_v37 = vld [vmem:[%s3042_s4 + $0x1e0] sm:$0xff]  }
 0x372   : > { %v2185_v38 = vpop.f32.mrf.mxu0 }
 0x373   : > { %v1230_v31 = vmax.f32 %v1167_v28, 0.0  ;;  %v2428_v38 = vld [vmem:[%s3042_s4 + $0x1d8] sm:$0xff]  }
 0x374   : > { %v2845_v39 = vpop.f32.mrf.mxu0 }
 0x375   : > { %v1172_v26 = vadd.f32 %v2845_v39, %v1083_v0  ;;  %v2429_v39 = vld [vmem:[%s3042_s4 + $0x1d0] sm:$0xff]  }
 0x376   : > { %v2188_v40 = vpop.f32.mrf.mxu0 }
 0x377   : > { %v1231_v30 = vmax.f32 %v1172_v26, 0.0  ;;  %v257_v40 = vld [vmem:[%s3044_s6] sm:$0x1] }
 0x378   : > { %v1176_v41 = vpop.f32.mrf.mxu0 }
 0x379   : > { %v1177_v23 = vadd.f32 %v1176_v41, %v1083_v0  ;;  %v1443_v41 = vrot.slane %v257_v40, %v2802_v20 }
 0x37a   : > { %v2191_v42 = vpop.f32.mrf.mxu0 }
 0x37b   : > { %v1232_v29 = vmax.f32 %v1177_v23, 0.0  ;;  %1444 = vrot.lane.b32.xlu1 %v1443_v41, %s2479_s10  ;;  %v1249_v42 = vstv %s1248_s11 }
 0x37c   : > { %v1181_v43 = vpop.f32.mrf.mxu0  ;;  %vm1250_vm7 = vcmp.eq.s32.totalorder %v1244_v25, %v1249_v42 }
 0x37d   : > { %v1182_v21 = vadd.f32 %v1181_v43, %v1083_v0  ;;  %v1931_v43 = vsel %vm1250_vm7, 1.0, %v2476_v60 }
 0x37e   : > { %v2194_v44 = vpop.f32.mrf.mxu0 }
 0x37f   : > { %v1233_v27 = vmax.f32 %v1182_v21, 0.0  ;;  %v1979_v21 = vld [vmem:[%s3042_s4 + $0x228] sm:$0xff]  }
 0x380   : > { %v1186_v45 = vpop.f32.mrf.mxu0  ;;  %v1957_v25 = vunpack.c.l.bf16 %v1979_v21 }
 0x381   : > { %v1187_v17 = vadd.f32 %v1186_v45, %v1083_v0 }
 0x382   : > { %v2197_v46 = vpop.f32.mrf.mxu0 }
 0x383   : > { %v1234_v24 = vmax.f32 %v1187_v17, 0.0  ;;  %v2439_v17 = vld [vmem:[%s3042_s4 + $0x258] sm:$0xff]  }
 0x384   : > { %v1191_v47 = vpop.f32.mrf.mxu0 }
 0x385   : > { %v1192_v15 = vadd.f32 %v1191_v47, %v1083_v0 }
 0x386   : > { %v2200_v48 = vpop.f32.mrf.mxu0 }
 0x387   : > { %v1235_v22 = vmax.f32 %v1192_v15, 0.0  ;;  %v1344_v48 = vld [vmem:[%s3042_s4 + $0x210] sm:$0x1] }
 0x388   : > { %v1196_v49 = vpop.f32.mrf.mxu0 }
 0x389   : > { %v1197_v13 = vadd.f32 %v1196_v49, %v1083_v0  ;;  %v1345_v49 = vunpack.c.l.bf16 %v1344_v48 }
 0x38a   : > { %v2203_v50 = vpop.f32.mrf.mxu0 }
 0x38b   : > { %v1236_v19 = vmax.f32 %v1197_v13, 0.0 }
 0x38c   : > { %v1201_v51 = vpop.f32.mrf.mxu0 }
 0x38d   : > { %v1202_v11 = vadd.f32 %v1201_v51, %v1083_v0 }
 0x38e   : > { %v2206_v52 = vpop.f32.mrf.mxu0 }
 0x38f   : > { %v1237_v16 = vmax.f32 %v1202_v11, 0.0 }
 0x390   : > { %v1206_v53 = vpop.f32.mrf.mxu0 }
 0x391   : > { %v1207_v9 = vadd.f32 %v1206_v53, %v1083_v0 }
 0x392   : > { %v2209_v54 = vpop.f32.mrf.mxu0 }
 0x393   : > { %v1238_v14 = vmax.f32 %v1207_v9, 0.0 }
 0x394   : > { %v1211_v55 = vpop.f32.mrf.mxu0 }
 0x395   : > { %v1212_v7 = vadd.f32 %v1211_v55, %v1083_v0 }
 0x396   : > { %v2212_v56 = vpop.f32.mrf.mxu0 }
 0x397   : > { %v1239_v12 = vmax.f32 %v1212_v7, 0.0 }
 0x398   : > { %v1216_v58 = vpop.f32.mrf.mxu0 }
 0x399   : > { %v1217_v5 = vadd.f32 %v1216_v58, %v1083_v0 }
 0x39a   : > { %v2215_v59 = vpop.f32.mrf.mxu0 }
 0x39b   : > { %v1240_v10 = vmax.f32 %v1217_v5, 0.0  ;;  %v2433_v5 = vld [vmem:[%s3042_s4 + $0x288] sm:$0xff]  }
 0x39c   : > { %v1221_v62 = vpop.f32.mrf.mxu0 }
 0x39d   : > { %v1222_v2 = vadd.f32 %v1221_v62, %v1083_v0 }
 0x39e   : > { %v2218_v63 = vpop.f32.mrf.mxu0 }
 0x39f   : > { %v1241_v8 = vmax.f32 %v1222_v2, 0.0  ;;  %v2431_v2 = vld [vmem:[%s3042_s4 + $0x214] sm:$0xff]  }
 0x3a0   : > { %v1226_v1 = vpop.f32.mrf.mxu0 }
 0x3a1   : > { %v1227_v3 = vadd.f32 %v1226_v1, %v1083_v0  ;;  %v2430_v1 = vld [vmem:[%s3042_s4 + $0x21c] sm:$0xff]  }
 0x3a2   : > { %v2221_v4 = vpop.f32.mrf.mxu0 }
 0x3a3   : > { %v1242_v6 = vmax.f32 %v1227_v3, 0.0  ;;  %v2432_v4 = vld [vmem:[%s3042_s4 + $0x290] sm:$0xff]  }
 0x3a4   : > { %2278 = vmatpush3.bf16.msra.mxu0 %v2432_v4 }
 0x3a5   : > { %2223 = vmatpush3.msra.mxu1 %v1242_v6  ;;  %2279 = vmatprep.subr.bf16.mxu0 %v2476_v60  ;;  %v2434_v6 = vld [vmem:[%s3042_s4 + $0x280] sm:$0xff]  }
 0x3a6   : > { %2224 = vmatprep.subr.mxu1 %v2476_v60 }
 0x3a7   : > { %2225 = vmatpush3.msra.mxu1 %v1241_v8  ;;  %v2435_v8 = vld [vmem:[%s3042_s4 + $0x278] sm:$0xff]  }
 0x3a8   : > { %2226 = vmatprep.subr.mxu1 %v2476_v60  ;;  %2280 = vmatpush3.bf16.msra.mxu0 %v2433_v5  ;;  %v1605_v5 = vld [vmem:[%s3042_s4 + $0x298] sm:$0x1] }
 0x3a9   : > { %2227 = vmatpush3.msra.mxu1 %v1240_v10  ;;  %2281 = vmatprep.subr.bf16.mxu0 %v2476_v60 }
 0x3aa   : > { %2228 = vmatprep.subr.mxu1 %v2476_v60 }
 0x3ab   : > { %2229 = vmatpush3.msra.mxu1 %v1239_v12  ;;  %v2436_v12 = vld [vmem:[%s3042_s4 + $0x270] sm:$0xff]  }
 0x3ac   : > { %2230 = vmatprep.subr.mxu1 %v2476_v60  ;;  %2282 = vmatpush3.bf16.msra.mxu0 %v2434_v6  ;;  %v1606_v6 = vunpack.c.l.bf16 %v1605_v5 }
 0x3ad   : > { %2231 = vmatpush3.msra.mxu1 %v1238_v14  ;;  %2283 = vmatprep.subr.bf16.mxu0 %v2476_v60  ;;  %v2437_v14 = vld [vmem:[%s3042_s4 + $0x268] sm:$0xff]  }
 0x3ae   : > { %2232 = vmatprep.subr.mxu1 %v2476_v60 }
 0x3af   : > { %2233 = vmatpush3.msra.mxu1 %v1237_v16  ;;  %v2438_v16 = vld [vmem:[%s3042_s4 + $0x260] sm:$0xff]  }
 0x3b0   : > { %2234 = vmatprep.subr.mxu1 %v2476_v60  ;;  %2284 = vmatpush3.bf16.msra.mxu0 %v2435_v8 }
 0x3b1   : > { %2235 = vmatpush3.msra.mxu1 %v1236_v19  ;;  %2285 = vmatprep.subr.bf16.mxu0 %v2476_v60  ;;  %v1533_v19 = vld [vmem:[%s3042_s4 + $0x224] sm:$0xf] }
 0x3b2   : > { %2236 = vmatprep.subr.mxu1 %v2476_v60 }
 0x3b3   : > { %2237 = vmatpush3.msra.mxu1 %v1235_v22  ;;  %v1546_v22 = vunpack.c.l.bf16 %v1533_v19 }
 0x3b4   : > { %2238 = vmatprep.subr.mxu1 %v2476_v60  ;;  %2286 = vmatpush3.bf16.msra.mxu0 %v2436_v12 }
 0x3b5   : > { %2239 = vmatpush3.msra.mxu1 %v1234_v24  ;;  %2287 = vmatprep.subr.bf16.mxu0 %v2476_v60 }
 0x3b6   : > { %2240 = vmatprep.subr.mxu1 %v2476_v60 }
 0x3b7   : > { %2241 = vmatpush3.msra.mxu1 %v1233_v27 }
 0x3b8   : > { %2242 = vmatprep.subr.mxu1 %v2476_v60  ;;  %2288 = vmatpush3.bf16.msra.mxu0 %v2437_v14 }
 0x3b9   : > { %2243 = vmatpush3.msra.mxu1 %v1232_v29  ;;  %2289 = vmatprep.subr.bf16.mxu0 %v2476_v60 }
 0x3ba   : > { %2244 = vmatprep.subr.mxu1 %v2476_v60 }
 0x3bb   : > { %2245 = vmatpush3.msra.mxu1 %v1231_v30  ;;  %v1958_v30 = vunpack.c.h.bf16 %v1979_v21 }
 0x3bc   : > { %2246 = vmatprep.subr.mxu1 %v2476_v60  ;;  %2290 = vmatpush3.bf16.msra.mxu0 %v2438_v16 }
 0x3bd   : > { %2247 = vmatpush3.msra.mxu1 %v1230_v31  ;;  %2291 = vmatprep.subr.bf16.mxu0 %v2476_v60  ;;  %v1980_v31 = vld [vmem:[%s3042_s4 + $0x230] sm:$0xff]  }
 0x3be   : > { %2249 = vmatmul.mubr.msk.f32.vlgmr.msra.gmra.mxu1 %vm1253_vm6, %v1246_v18  ;;  %2251 = vmatprep.subr.bf16.mxu1 %v2476_v60 }
 0x3bf   : > { %2252 = vmatpush3.bf16.msra.mxu1 %v2422_v32  ;;  %2267 = vmatprep.mubr.msk.f32.mxu1 %vm2477_vm1, %v2476_v60 }
 0x3c0   : > { %2253 = vmatprep.subr.bf16.mxu1 %v2476_v60  ;;  %2292 = vmatpush3.bf16.msra.mxu0 %v2439_v17 }
 0x3c3   : > { %2254 = vmatpush3.bf16.msra.mxu1 %v2423_v33  ;;  %v1961_v33 = vunpack.c.l.bf16 %v1980_v31 }
 0x3c4   : > { %2255 = vmatprep.subr.bf16.mxu1 %v2476_v60 }
 0x3c7   : > { %2256 = vmatpush3.bf16.msra.mxu1 %v2424_v34 }
 0x3c8   : > { %2257 = vmatprep.subr.bf16.mxu1 %v2476_v60 }
 0x3cb   : > { %2258 = vmatpush3.bf16.msra.mxu1 %v2425_v35 }
 0x3cc   : > { %2259 = vmatprep.subr.bf16.mxu1 %v2476_v60 }
 0x3cf   : > { %2260 = vmatpush3.bf16.msra.mxu1 %v2426_v36  ;;  %v1962_v36 = vunpack.c.h.bf16 %v1980_v31 }
 0x3d0   : > { %2261 = vmatprep.subr.bf16.mxu1 %v2476_v60 }
 0x3d3   : > { %2262 = vmatpush3.bf16.msra.mxu1 %v2427_v37  ;;  %v1981_v37 = vld [vmem:[%s3042_s4 + $0x238] sm:$0xff]  }
 0x3d4   : > { %2263 = vmatprep.subr.bf16.mxu1 %v2476_v60 }
 0x3d7   : > { %2264 = vmatpush3.bf16.msra.mxu1 %v2428_v38 }
 0x3d8   : > { %2265 = vmatprep.subr.bf16.mxu1 %v2476_v60 }
 0x3db   : > { %2266 = vmatpush3.bf16.msra.mxu1 %v2429_v39 }
 0x3dc   : > { %2270 = vmatprep.subr.bf16.mxu1 %v2476_v60 }
 0x3ed   : > { %v1445_v61 = vpop.permute.xlu1 %1444 }
 0x47e   : > { %v1323_v44 = vpop.f32.mrf.mxu1 }
 0x47f   : > { %v1324_v45 = vadd.f32 %v1931_v43, %v1323_v44  ;;  %v1966_v43 = vunpack.c.h.bf16 %v1981_v37  ;;  %v1982_v44 = vld [vmem:[%s3042_s4 + $0x240] sm:$0xff]  }
 0x480   : > { %v2250_v46 = vpop.f32.mrf.mxu1 }
 0x481   : > { %v1327_v47 = vadd.f32 %v1324_v45, %v257_v40  ;;  %v1965_v40 = vunpack.c.l.bf16 %v1981_v37 }
 0x483   : > { %2268 = vmatmul.mubr.f32.vlgmr.msra.gmra.mxu1 %v1327_v47  ;;  %v1969_v47 = vunpack.c.l.bf16 %v1982_v44 }
 0x484   : > { %2274 = vmatprep.mubr.msk.f32.mxu1 %vm2477_vm1, %v2476_v60  ;;  %2271 = vmatpush3.bf16.msra.mxu1 %v2430_v1 }
 0x485   : > { %2272 = vmatprep.subr.bf16.mxu1 %v2476_v60 }
 0x488   : > { %2273 = vmatpush3.bf16.msra.mxu1 %v2431_v2 }
 0x543   : > { %v1428_v50 = vpop.f32.mrf.mxu1 }
 0x544   : > { %v1429_v51 = vadd.f32 %v1428_v50, %v1345_v49  ;;  %v1970_v50 = vunpack.c.h.bf16 %v1982_v44 }
 0x545   : > { %v2269_v52 = vpop.f32.mrf.mxu1 }
 0x546   : > { %2444 = vtanh.f32 %v1429_v51  ;;  %v1941_v54 = vmul.f32 -1.442695, %v1429_v51  ;;  %v1983_v51 = vld [vmem:[%s3042_s4 + $0x248] sm:$0xff]  }
 0x548   : > { %2446 = vpow2.f32 %v1941_v54  ;;  %v1973_v54 = vunpack.c.l.bf16 %v1983_v51 }
 0x553   : > { %v2445_v53 = vpop.eup %2444 }
 0x554   : > { %1449 = vrot.lane.b32.xlu0 %v2445_v53, %s2480_s0 }
 0x555   : > { %v2447_v55 = vpop.eup %2446 }
 0x556   : > { %v1435_v56 = vadd.f32 1.0, %v2447_v55 }
 0x558   : > { %2448 = vrcp.f32 %v1435_v56 }
 0x565   : > { %v2449_v57 = vpop.eup %2448 }
 0x566   : > { %v1447_v62 = vmul.f32 %v2449_v57, %v1445_v61 }
 0x5c6   : > { %v1450_v58 = vpop.permute.xlu0 %1449 }
 0x5c7   : > { %v1452_v59 = vmul.f32 %v2449_v57, %v1450_v58  ;;  %v1984_v58 = vld [vmem:[%s3042_s4 + $0x250] sm:$0xff]  }
 0x5c8   : > { %v1978_v1 = vunpack.c.h.bf16 %v1984_v58 }
 0x5c9   : > { %1454 = vrot.lane.b32.xlu1 %v1452_v59, %s2480_s0 }
 0x63b   : > { %v1455_v63 = vpop.permute.xlu1 %1454 }
 0x63c   : > { %v1457_v0 = vadd.f32 %v1455_v63, %v1447_v62  ;;  %v1977_v62 = vunpack.c.l.bf16 %v1984_v58 }
 0x63e   : > { %2450 = vtanh.f32 %v1457_v0 }
 0x64b   : > { %v2451_v3 = vpop.eup %2450 }
 0x64c   : > { %1460 = vrot.lane.b32.xlu0 %v2451_v3, %s2480_s0 }
 0x650   : > { %1465 = vrot.lane.b32.xlu0 %v1457_v0, %s2479_s10 }
 0x6be   : > { %v1461_v7 = vpop.permute.xlu0 %1460 }
 0x6bf   : > { %v1463_v9 = vmul.f32 %v2449_v57, %v1461_v7  ;;  %v1974_v57 = vunpack.c.h.bf16 %v1983_v51  ;;  %v1610_v7 = vrot.slane %v1606_v6, %v2802_v20 }
 0x6c1   : > { %v1469_v10 = vsel %vm1468_vm8, 0.0, %v1463_v9  ;;  %1478 = vrot.lane.b32.xlu1 %v1463_v9, %s2479_s10 }
 0x6c2   : > { %v1466_v11 = vpop.permute.xlu0 %1465 }
 0x6c3   : > { %v1471_v13 = vsel %vm1470_vm9, %v1469_v10, %v1466_v11 }
 0x6c4   : > { %1472 = vst [vmem:[%s3044_s6] sm:$0x1] %v1471_v13 }
 0x733   : > { %v1479_v15 = vpop.permute.xlu1 %1478 }
 0x734   : > { %2275 = vmatmul.mubr.msk.f32.vlgmr.msra.gmra.mxu1 %vm1492_vm10, %v1479_v15 }
 0x7f4   : > { %v1529_v23 = vpop.f32.mrf.mxu1 }
 0x7f5   : > { %v2964_v24 = vrot.slane %v1529_v23, %v2802_v20 }
 0x7f6   : > { %v2276_v26 = vpop.f32.mrf.mxu1 }
 0x7f7   : > { %v1563_v27 = vadd.f32 %v2964_v24, %v1546_v22  ;;  %v1564_v29 = vadd.f32 %v1957_v25, %v2964_v24  ;;  %v1565_v32 = vadd.f32 %v1958_v30, %v2964_v24  ;;  %v1566_v35 = vadd.f32 %v1961_v33, %v2964_v24 }
 0x7f8   : > { %v1567_v39 = vadd.f32 %v1962_v36, %v2964_v24  ;;  %v1568_v42 = vadd.f32 %v1965_v40, %v2964_v24  ;;  %v1569_v46 = vadd.f32 %v1966_v43, %v2964_v24  ;;  %v1570_v49 = vadd.f32 %v1969_v47, %v2964_v24 }
 0x7f9   : > { %v1576_v28 = vmax.f32 %v1563_v27, 0.0  ;;  %v1577_v18 = vmax.f32 %v1564_v29, 0.0  ;;  %v1578_v34 = vmax.f32 %v1565_v32, 0.0  ;;  %v1579_v38 = vmax.f32 %v1566_v35, 0.0 }
 0x7fa   : > { %v1580_v41 = vmax.f32 %v1567_v39, 0.0  ;;  %v1581_v45 = vmax.f32 %v1568_v42, 0.0  ;;  %v1582_v48 = vmax.f32 %v1569_v46, 0.0  ;;  %v1583_v52 = vmax.f32 %v1570_v49, 0.0 }
 0x7fb   : > { %2294 = vmatmul.mubr.f32.vlgmr.msra.gmra.mxu0 %v1576_v28  ;;  %v1571_v53 = vadd.f32 %v1970_v50, %v2964_v24  ;;  %v1572_v56 = vadd.f32 %v1973_v54, %v2964_v24  ;;  %v1573_v61 = vadd.f32 %v1974_v57, %v2964_v24  ;;  %v1574_v0 = vadd.f32 %v1977_v62, %v2964_v24 }
 0x7fc   : > { %2296 = vmatprep.mubr.msk.f32.mxu0 %vm2477_vm1, %v2476_v60  ;;  %v1575_v3 = vadd.f32 %v1978_v1, %v2964_v24 }
 0x7fd   : > { %v1584_v55 = vmax.f32 %v1571_v53, 0.0  ;;  %v1585_v59 = vmax.f32 %v1572_v56, 0.0  ;;  %v1586_v63 = vmax.f32 %v1573_v61, 0.0  ;;  %v1587_v2 = vmax.f32 %v1574_v0, 0.0 }
 0x7fe   : > { %v1588_v4 = vmax.f32 %v1575_v3, 0.0 }
 0x7ff   : > { %2297 = vmatmul.mubr.f32.gmra.mxu0 %v1577_v18 }
 0x800   : > { %2299 = vmatprep.mubr.msk.f32.mxu0 %vm2477_vm1, %v2476_v60 }
 0x803   : > { %2300 = vmatmul.mubr.f32.gmra.mxu0 %v1578_v34 }
 0x804   : > { %2302 = vmatprep.mubr.msk.f32.mxu0 %vm2477_vm1, %v2476_v60 }
 0x807   : > { %2303 = vmatmul.mubr.f32.gmra.mxu0 %v1579_v38 }
 0x808   : > { %2305 = vmatprep.mubr.msk.f32.mxu0 %vm2477_vm1, %v2476_v60 }
 0x80b   : > { %2306 = vmatmul.mubr.f32.gmra.mxu0 %v1580_v41 }
 0x80c   : > { %2308 = vmatprep.mubr.msk.f32.mxu0 %vm2477_vm1, %v2476_v60 }
 0x80f   : > { %2309 = vmatmul.mubr.f32.gmra.mxu0 %v1581_v45 }
 0x810   : > { %2311 = vmatprep.mubr.msk.f32.mxu0 %vm2477_vm1, %v2476_v60 }
 0x813   : > { %2312 = vmatmul.mubr.f32.gmra.mxu0 %v1582_v48 }
 0x814   : > { %2314 = vmatprep.mubr.msk.f32.mxu0 %vm2477_vm1, %v2476_v60 }
 0x817   : > { %2315 = vmatmul.mubr.f32.gmra.mxu0 %v1583_v52 }
 0x818   : > { %2317 = vmatprep.mubr.msk.f32.mxu0 %vm2477_vm1, %v2476_v60 }
 0x81b   : > { %2318 = vmatmul.mubr.f32.gmra.mxu0 %v1584_v55 }
 0x81c   : > { %2320 = vmatprep.mubr.msk.f32.mxu0 %vm2477_vm1, %v2476_v60 }
 0x81f   : > { %2321 = vmatmul.mubr.f32.gmra.mxu0 %v1585_v59 }
 0x820   : > { %2323 = vmatprep.mubr.msk.f32.mxu0 %vm2477_vm1, %v2476_v60 }
 0x823   : > { %2324 = vmatmul.mubr.f32.gmra.mxu0 %v1586_v63 }
 0x824   : > { %2326 = vmatprep.mubr.msk.f32.mxu0 %vm2477_vm1, %v2476_v60 }
 0x827   : > { %2327 = vmatmul.mubr.f32.gmra.mxu0 %v1587_v2 }
 0x828   : > { %2329 = vmatprep.mubr.msk.f32.mxu0 %vm2477_vm1, %v2476_v60 }
 0x82b   : > { %2330 = vmatmul.mubr.f32.gmra.mxu0 %v1588_v4 }
 0x8bb   : > { %v1693_v8 = vpop.f32.mrf.mxu0 }
 0x8bc   : > { %v1694_v9 = vadd.f32 %v1693_v8, %v1610_v7 }
 0x8bd   : > { %v2295_v10 = vpop.f32.mrf.mxu0 }
 0x8be   : > { %1757 = vst [vmem:[%s2544_s15] sm:$0xff] %v1694_v9 }
 0x8bf   : > { %v1698_v11 = vpop.f32.mrf.mxu0 }
 0x8c0   : > { %v1699_v12 = vadd.f32 %v1698_v11, %v1610_v7 }
 0x8c1   : > { %v2298_v13 = vpop.f32.mrf.mxu0 }
 0x8c2   : > { %1758 = vst [vmem:[%s2544_s15 + $0x8] sm:$0xff] %v1699_v12 }
 0x8c3   : > { %v1703_v60 = vpop.f32.mrf.mxu0 }
 0x8c4   : > { %v1704_v14 = vadd.f32 %v1703_v60, %v1610_v7 }
 0x8c5   : > { %v2301_v15 = vpop.f32.mrf.mxu0 }
 0x8c6   : > { %1759 = vst [vmem:[%s2544_s15 + $0x10] sm:$0xff] %v1704_v14 }
 0x8c7   : > { %v1708_v16 = vpop.f32.mrf.mxu0 }
 0x8c8   : > { %v1709_v17 = vadd.f32 %v1708_v16, %v1610_v7 }
 0x8c9   : > { %v2304_v19 = vpop.f32.mrf.mxu0 }
 0x8ca   : > { %1760 = vst [vmem:[%s2544_s15 + $0x18] sm:$0xff] %v1709_v17 }
 0x8cb   : > { %v1713_v20 = vpop.f32.mrf.mxu0 }
 0x8cc   : > { %v1714_v21 = vadd.f32 %v1713_v20, %v1610_v7 }
 0x8cd   : > { %v2307_v22 = vpop.f32.mrf.mxu0 }
 0x8ce   : > { %1761 = vst [vmem:[%s2544_s15 + $0x20] sm:$0xff] %v1714_v21 }
 0x8cf   : > { %v1718_v23 = vpop.f32.mrf.mxu0 }
 0x8d0   : > { %v1719_v24 = vadd.f32 %v1718_v23, %v1610_v7 }
 0x8d1   : > { %v2310_v25 = vpop.f32.mrf.mxu0 }
 0x8d2   : > { %1762 = vst [vmem:[%s2544_s15 + $0x28] sm:$0xff] %v1719_v24 }
 0x8d3   : > { %v1723_v26 = vpop.f32.mrf.mxu0 }
 0x8d4   : > { %v1724_v27 = vadd.f32 %v1723_v26, %v1610_v7 }
 0x8d5   : > { %v2313_v28 = vpop.f32.mrf.mxu0 }
 0x8d6   : > { %1763 = vst [vmem:[%s2544_s15 + $0x30] sm:$0xff] %v1724_v27 }
 0x8d7   : > { %v1728_v29 = vpop.f32.mrf.mxu0 }
 0x8d8   : > { %v1729_v30 = vadd.f32 %v1728_v29, %v1610_v7 }
 0x8d9   : > { %v2316_v31 = vpop.f32.mrf.mxu0 }
 0x8da   : > { %1764 = vst [vmem:[%s2544_s15 + $0x38] sm:$0xff] %v1729_v30 }
 0x8db   : > { %v1733_v18 = vpop.f32.mrf.mxu0 }
 0x8dc   : > { %v1734_v32 = vadd.f32 %v1733_v18, %v1610_v7 }
 0x8dd   : > { %v2319_v33 = vpop.f32.mrf.mxu0 }
 0x8de   : > { %1765 = vst [vmem:[%s2544_s15 + $0x40] sm:$0xff] %v1734_v32 }
 0x8df   : > { %v1738_v34 = vpop.f32.mrf.mxu0 }
 0x8e0   : > { %v1739_v35 = vadd.f32 %v1738_v34, %v1610_v7 }
 0x8e1   : > { %v2322_v36 = vpop.f32.mrf.mxu0 }
 0x8e2   : > { %1766 = vst [vmem:[%s2544_s15 + $0x48] sm:$0xff] %v1739_v35 }
 0x8e3   : > { %v1743_v37 = vpop.f32.mrf.mxu0 }
 0x8e4   : > { %v1744_v38 = vadd.f32 %v1743_v37, %v1610_v7 }
 0x8e5   : > { %v2325_v39 = vpop.f32.mrf.mxu0 }
 0x8e6   : > { %1767 = vst [vmem:[%s2544_s15 + $0x50] sm:$0xff] %v1744_v38 }
 0x8e7   : > { %v1748_v40 = vpop.f32.mrf.mxu0 }
 0x8e8   : > { %v1749_v41 = vadd.f32 %v1748_v40, %v1610_v7 }
 0x8e9   : > { %v2328_v42 = vpop.f32.mrf.mxu0 }
 0x8ea   : > { %1768 = vst [vmem:[%s2544_s15 + $0x58] sm:$0xff] %v1749_v41 }
 0x8eb   : > { %v1753_v43 = vpop.f32.mrf.mxu0 }
 0x8ec   : > { %v1754_v44 = vadd.f32 %v1753_v43, %v1610_v7 }
 0x8ed   : > { %v2331_v45 = vpop.f32.mrf.mxu0 }
 0x8ee   : > { %1769 = vst [vmem:[%s2544_s15 + $0x60] sm:$0xff] %v1754_v44 }
 0x8ef PF: > { %s23_s26 = sadd.s32 1, %s2472_s26  }
 0x8f0   : > { %p20_p10 = scmp.ge.s32.totalorder %s23_s26, 6  }
 0x8f2   :  { %22 = sbr.rel (!%p20_p10) target bundleno = 16 (0x10), region = 81 }

</bundles_post_ra>
